<compile_context>
chip_gen: v7x
topology: tpu7x:2x2x1
jax: 0.10.0
libtpu: 0.0.40
codegen_flags: <defaults>
</compile_context>

<pallas_src>
import functools

import numpy as np
import jax
import jax.numpy as jnp
from jax import lax
from jax.experimental import pallas as pl
from jax.experimental.pallas import tpu as pltpu


# ----------------------------- Pallas kernel ------------------------------ #
def vgg_frame_kernel(x_ref, band1_ref, b1_ref, band2_ref, b2_ref, wz_ref,
                     bfc_ref, out_ref, *, c2):
    f32, bf16 = jnp.float32, jnp.bfloat16
    bt, h, lin = x_ref.shape
    hh, l2, fpad = wz_ref.shape
    rows = bt * h

    x = x_ref[...].reshape(rows, lin)              # (Bt*H, W*Cin) lane-fused

    def shift_rows(v, delta):
        """out[r] = v[r + delta] within each H-row sample block, zero outside.
        Circular XLU roll + per-sample boundary mask (the mask also kills the
        wrap-around / cross-sample contamination)."""
        rolled = pltpu.roll(v, (-delta) % rows, axis=0)
        r_idx = lax.broadcasted_iota(jnp.int32, v.shape, 0) % h
        bad = r_idx == (0 if delta < 0 else h - 1)
        return jnp.where(bad, 0.0, rolled)

    def conv3x3(v, band_ref, bias_ref):
        # All 3 kh taps in ONE MXU matmul: lane-concat the h-1 / h / h+1 rows
        # against the stacked banded weight ((kw, cin) folded into the bands).
        cat = jnp.concatenate([shift_rows(v, -1), v, shift_rows(v, +1)],
                              axis=-1)
        acc = jnp.dot(cat.astype(bf16), band_ref[...],
                      preferred_element_type=f32)
        return jnp.maximum(acc + bias_ref[...], 0.0)

    h1 = conv3x3(x, band1_ref, b1_ref)             # (Bt*H, W*C1)
    y = conv3x3(h1, band2_ref, b2_ref)             # (Bt*H, W*C2)

    # 2x2 max-pool: lane roll brings (w+1, c) next to (w, c); the +1 row shift
    # brings row h+1.  Wrap-around garbage lands only in the last w group /
    # last row, which the FC weights below never read (zeros at odd-w lanes,
    # odd rows skipped), so the lane roll needs no extra mask.
    pw = jnp.maximum(y, pltpu.roll(y, l2 - c2, axis=1))
    pooled = jnp.maximum(pw, shift_rows(pw, +1))   # valid at even rows

    # flatten (NCHW order, encoded in wz) + Linear: Hh batched MXU dots with
    # M = Bt, accumulated in f32.  wz[hq] is zero at odd-w lanes and at padded
    # output features.
    pooled3 = pooled.reshape(bt, h, l2)
    acc = jnp.zeros((bt, fpad), f32)
    for hq in range(hh):
        row = pooled3[:, 2 * hq, :].astype(bf16)   # (Bt, W*C2)
        acc = acc + jnp.dot(row, wz_ref[hq], preferred_element_type=f32)
    out_ref[...] = acc + bfc_ref[...]


# --------------------- host-side weight repacking (glue) ------------------- #
def _stacked_band_matrix(w_oihw, width):
    """Stack the 3 kh taps of a 3x3 'same' conv into one (3*W*Ci, W*Co) banded
    matrix: band[kh*W*Ci + wi*Ci + ci, wo*Co + co] = w[co, ci, kh, wi-wo+1]."""
    w = np.asarray(w_oihw, np.float32)
    co_n, ci_n = w.shape[0], w.shape[1]
    band = np.zeros((3 * width * ci_n, width * co_n), np.float32)
    for kh in range(3):
        for kw in range(3):
            blk = w[:, :, kh, kw].T                          # (Ci, Co)
            for wo in range(width):
                wi = wo + kw - 1
                if 0 <= wi < width:
                    r0 = (kh * width + wi) * ci_n
                    band[r0:r0 + ci_n, wo * co_n:(wo + 1) * co_n] = blk
    return band


def _fc_weight_slabs(wfc, c2, hh, wh, fpad):
    """(Hh, W*C2, Fpad) slabs; zero at odd-w lanes and padded features, encoding
    the PyTorch NCHW flatten order (c, h', w') of the Linear layer."""
    wfc = np.asarray(wfc, np.float32)
    f = wfc.shape[0]
    w4 = wfc.reshape(f, c2, hh, wh)                          # [f, c, h', w']
    wz = np.zeros((hh, 2 * wh * c2, fpad), np.float32)
    for hq in range(hh):
        for wq in range(wh):
            for c in range(c2):
                wz[hq, (2 * wq) * c2 + c, :f] = w4[:, c, hq, wq]
    return wz


# ------------------------------ JAX wrapper -------------------------------- #
def vgg_frame_encoder(x_nchw, w1, b1, w2, b2, wfc, bfc, *, batch_tile=16):
    """x_nchw: (B, Cin, H, W) float32.  Returns (B, feature_dim) float32."""
    B, Cin, H, W = x_nchw.shape
    C1, C2, F = w1.shape[0], w2.shape[0], wfc.shape[0]
    Hh, Wh = H // 2, W // 2
    Fpad = ((F + 127) // 128) * 128
    Bt = B if B <= batch_tile else batch_tile
    Bpad = -(-B // Bt) * Bt

    # One-time weight repacking (pure layout glue; FLOPs stay in the kernel).
    # MXU operands are bf16 (native on v5e/v6e/v7x); accumulation stays f32.
    band1 = jnp.asarray(_stacked_band_matrix(w1, W), jnp.bfloat16)  # (3*W*Cin, W*C1)
    band2 = jnp.asarray(_stacked_band_matrix(w2, W), jnp.bfloat16)  # (3*W*C1,  W*C2)
    b1row = jnp.asarray(np.tile(np.asarray(b1, np.float32), W)[None, :])
    b2row = jnp.asarray(np.tile(np.asarray(b2, np.float32), W)[None, :])
    wz = jnp.asarray(_fc_weight_slabs(wfc, C2, Hh, Wh, Fpad), jnp.bfloat16)
    bfc_np = np.zeros((1, Fpad), np.float32)
    bfc_np[0, :F] = np.asarray(bfc, np.float32)
    bfc_p = jnp.asarray(bfc_np)

    # Per-call input relayout: NCHW -> (B, H, W*Cin) lane-fused rows.
    x_rows = jnp.transpose(x_nchw, (0, 2, 3, 1)).reshape(B, H, W * Cin)
    if Bpad != B:
        x_rows = jnp.pad(x_rows, ((0, Bpad - B), (0, 0), (0, 0)))

    flops = 2 * Bpad * (H * (3 * W * Cin) * (W * C1)
                        + H * (3 * W * C1) * (W * C2)
                        + Hh * (W * C2) * Fpad)
    bytes_accessed = (4 * x_rows.size
                      + 2 * (band1.size + band2.size + wz.size)
                      + 4 * (b1row.size + b2row.size + Fpad + Bpad * Fpad))

    kernel = functools.partial(vgg_frame_kernel, c2=C2)

    out = pl.pallas_call(
        kernel,
        out_shape=jax.ShapeDtypeStruct((Bpad, Fpad), jnp.float32),
        grid=(Bpad // Bt,),
        in_specs=[
            pl.BlockSpec((Bt, H, W * Cin), lambda g: (g, 0, 0)),      # x rows
            pl.BlockSpec((3 * W * Cin, W * C1), lambda g: (0, 0)),    # band1
            pl.BlockSpec((1, W * C1), lambda g: (0, 0)),              # bias1
            pl.BlockSpec((3 * W * C1, W * C2), lambda g: (0, 0)),     # band2
            pl.BlockSpec((1, W * C2), lambda g: (0, 0)),              # bias2
            pl.BlockSpec((Hh, W * C2, Fpad), lambda g: (0, 0, 0)),    # FC slabs
            pl.BlockSpec((1, Fpad), lambda g: (0, 0)),                # FC bias
        ],
        out_specs=pl.BlockSpec((Bt, Fpad), lambda g: (g, 0)),
        compiler_params=pltpu.CompilerParams(
            dimension_semantics=("parallel",)),
        cost_estimate=pl.CostEstimate(flops=flops, transcendentals=0,
                                      bytes_accessed=bytes_accessed),
    )(x_rows, band1, b1row, band2, b2row, wz, bfc_p)

    return out[:B, :F]


# --------------------------- pure-JAX reference ---------------------------- #
def reference_forward(x, w1, b1, w2, b2, wfc, bfc):
    dn = lax.conv_dimension_numbers(x.shape, w1.shape, ("NCHW", "OIHW", "NCHW"))
    h = lax.conv_general_dilated(x, w1, (1, 1), "SAME", dimension_numbers=dn,
                                 precision=lax.Precision.HIGHEST)
    h = jax.nn.relu(h + b1[None, :, None, None])
    h = lax.conv_general_dilated(h, w2, (1, 1), "SAME", dimension_numbers=dn,
                                 precision=lax.Precision.HIGHEST)
    h = jax.nn.relu(h + b2[None, :, None, None])
    B, C, H, W = h.shape
    h = h.reshape(B, C, H // 2, 2, W // 2, 2).max(axis=(3, 5))
    hf = h.reshape(B, -1)
    return jnp.dot(hf, wfc.T, precision=lax.Precision.HIGHEST) + bfc


# ----------------------------------- main ----------------------------------- #
if __name__ == "__main__":
    B, Cin, H, W = 2, 4, 16, 16
    C1, C2 = 8, 8
    FEATURE_DIM = 64
    Hh, Wh = H // 2, W // 2

    key = jax.random.PRNGKey(0)
    kx, k1, k2, k3, k4, k5, k6 = jax.random.split(key, 7)

    x = jax.random.normal(kx, (B, Cin, H, W), jnp.float32) * 0.5
    w1 = jax.random.normal(k1, (C1, Cin, 3, 3), jnp.float32) * (1.0 / np.sqrt(Cin * 9))
    b1 = jax.random.normal(k2, (C1,), jnp.float32) * 0.1
    w2 = jax.random.normal(k3, (C2, C1, 3, 3), jnp.float32) * (1.0 / np.sqrt(C1 * 9))
    b2 = jax.random.normal(k4, (C2,), jnp.float32) * 0.1
    wfc = jax.random.normal(k5, (FEATURE_DIM, C2 * Hh * Wh), jnp.float32) * (
        1.0 / np.sqrt(C2 * Hh * Wh))
    bfc = jax.random.normal(k6, (FEATURE_DIM,), jnp.float32) * 0.1

    out = vgg_frame_encoder(x, w1, b1, w2, b2, wfc, bfc)
    out = jax.block_until_ready(out)

    ref = jax.block_until_ready(reference_forward(x, w1, b1, w2, b2, wfc, bfc))

    assert out.shape == (B, FEATURE_DIM), out.shape
    # Tolerance widened from 5e-3 to 2e-2: MXU operands are bf16 (f32 accumulation),
    # per the performance review; measured error budget is well inside this.
    np.testing.assert_allclose(np.asarray(out), np.asarray(ref),
                               rtol=2e-2, atol=2e-2)
    print("KERNEL_OK")
</pallas_src>

<mosaic_0001>
module attributes {stable_mosaic.version = 11 : i64} {
  func.func @vgg_frame_kernel(%arg0: i32, %arg1: memref<2x16x64xf32, #tpu.memory_space<vmem>>, %arg2: memref<192x128xbf16, #tpu.memory_space<vmem>>, %arg3: memref<1x128xf32, #tpu.memory_space<vmem>>, %arg4: memref<384x128xbf16, #tpu.memory_space<vmem>>, %arg5: memref<1x128xf32, #tpu.memory_space<vmem>>, %arg6: memref<8x128x128xbf16, #tpu.memory_space<vmem>>, %arg7: memref<1x128xf32, #tpu.memory_space<vmem>>, %arg8: memref<2x128xf32, #tpu.memory_space<vmem>>) attributes {dimension_semantics = [#tpu.dimension_semantics<parallel>], iteration_bounds = array<i64: 1>, scalar_prefetch = 0 : i64, scratch_operands = 0 : i64, tpu.core_type = #tpu.core_type<tc>, window_params = [{transform_indices = @transform_0, window_bounds = array<i64: 2, 16, 64>}, {pipeline_mode = #tpu.pipeline_mode<synchronous>, transform_indices = @transform_1, window_bounds = array<i64: 192, 128>}, {pipeline_mode = #tpu.pipeline_mode<synchronous>, transform_indices = @transform_2, window_bounds = array<i64: 1, 128>}, {pipeline_mode = #tpu.pipeline_mode<synchronous>, transform_indices = @transform_3, window_bounds = array<i64: 384, 128>}, {pipeline_mode = #tpu.pipeline_mode<synchronous>, transform_indices = @transform_4, window_bounds = array<i64: 1, 128>}, {pipeline_mode = #tpu.pipeline_mode<synchronous>, transform_indices = @transform_5, window_bounds = array<i64: 8, 128, 128>}, {pipeline_mode = #tpu.pipeline_mode<synchronous>, transform_indices = @transform_6, window_bounds = array<i64: 1, 128>}, {transform_indices = @transform_7, window_bounds = array<i64: 2, 128>}]} {
    %c0 = arith.constant 0 : index
    %c0_0 = arith.constant 0 : index
    %c0_1 = arith.constant 0 : index
    %0 = vector.load %arg1[%c0, %c0_0, %c0_1] : memref<2x16x64xf32, #tpu.memory_space<vmem>>, vector<2x16x64xf32>
    %1 = vector.shape_cast %0 : vector<2x16x64xf32> to vector<32x64xf32>
    %c1_i32 = arith.constant 1 : i32
    %2 = tpu.dynamic_rotate %1 by %c1_i32 dim 0 : vector<32x64xf32>, i32 -> vector<32x64xf32>
    %3 = tpu.iota {dimensions = array<i32: 0>} : vector<32x64xi32>
    %c16_i32 = arith.constant 16 : i32
    %c0_i32 = arith.constant 0 : i32
    %4 = arith.cmpi eq, %c16_i32, %c0_i32 : i32
    %c1_i32_2 = arith.constant 1 : i32
    %5 = arith.select %4, %c1_i32_2, %c16_i32 : i32
    %6 = vector.broadcast %5 : i32 to vector<32x64xi32>
    %7 = arith.remsi %3, %6 : vector<32x64xi32>
    %c0_i32_3 = arith.constant 0 : i32
    %8 = vector.broadcast %c0_i32_3 : i32 to vector<32x64xi32>
    %9 = arith.cmpi ne, %7, %8 : vector<32x64xi32>
    %c0_i32_4 = arith.constant 0 : i32
    %10 = vector.broadcast %c0_i32_4 : i32 to vector<32x64xi32>
    %11 = arith.cmpi slt, %7, %10 : vector<32x64xi32>
    %c0_i32_5 = arith.constant 0 : i32
    %12 = arith.cmpi slt, %5, %c0_i32_5 : i32
    %13 = vector.broadcast %12 : i1 to vector<32x64xi1>
    %14 = vector.broadcast %13 : vector<32x64xi1> to vector<32x64xi1>
    %15 = arith.xori %11, %14 : vector<32x64xi1>
    %16 = arith.andi %15, %9 : vector<32x64xi1>
    %17 = vector.broadcast %5 : i32 to vector<32x64xi32>
    %18 = arith.addi %7, %17 : vector<32x64xi32>
    %19 = arith.select %16, %18, %7 : vector<32x64xi1>, vector<32x64xi32>
    %c0_i32_6 = arith.constant 0 : i32
    %20 = vector.broadcast %c0_i32_6 : i32 to vector<32x64xi32>
    %21 = arith.cmpi eq, %19, %20 : vector<32x64xi32>
    %cst = arith.constant 0.000000e+00 : f32
    %22 = vector.broadcast %cst : f32 to vector<32x64xf32>
    %23 = arith.select %21, %22, %2 : vector<32x64xi1>, vector<32x64xf32>
    %c31_i32 = arith.constant 31 : i32
    %24 = tpu.dynamic_rotate %1 by %c31_i32 dim 0 : vector<32x64xf32>, i32 -> vector<32x64xf32>
    %25 = tpu.iota {dimensions = array<i32: 0>} : vector<32x64xi32>
    %c16_i32_7 = arith.constant 16 : i32
    %c0_i32_8 = arith.constant 0 : i32
    %26 = arith.cmpi eq, %c16_i32_7, %c0_i32_8 : i32
    %c1_i32_9 = arith.constant 1 : i32
    %27 = arith.select %26, %c1_i32_9, %c16_i32_7 : i32
    %28 = vector.broadcast %27 : i32 to vector<32x64xi32>
    %29 = arith.remsi %25, %28 : vector<32x64xi32>
    %c0_i32_10 = arith.constant 0 : i32
    %30 = vector.broadcast %c0_i32_10 : i32 to vector<32x64xi32>
    %31 = arith.cmpi ne, %29, %30 : vector<32x64xi32>
    %c0_i32_11 = arith.constant 0 : i32
    %32 = vector.broadcast %c0_i32_11 : i32 to vector<32x64xi32>
    %33 = arith.cmpi slt, %29, %32 : vector<32x64xi32>
    %c0_i32_12 = arith.constant 0 : i32
    %34 = arith.cmpi slt, %27, %c0_i32_12 : i32
    %35 = vector.broadcast %34 : i1 to vector<32x64xi1>
    %36 = vector.broadcast %35 : vector<32x64xi1> to vector<32x64xi1>
    %37 = arith.xori %33, %36 : vector<32x64xi1>
    %38 = arith.andi %37, %31 : vector<32x64xi1>
    %39 = vector.broadcast %27 : i32 to vector<32x64xi32>
    %40 = arith.addi %29, %39 : vector<32x64xi32>
    %41 = arith.select %38, %40, %29 : vector<32x64xi1>, vector<32x64xi32>
    %c15_i32 = arith.constant 15 : i32
    %42 = vector.broadcast %c15_i32 : i32 to vector<32x64xi32>
    %43 = arith.cmpi eq, %41, %42 : vector<32x64xi32>
    %cst_13 = arith.constant 0.000000e+00 : f32
    %44 = vector.broadcast %cst_13 : f32 to vector<32x64xf32>
    %45 = arith.select %43, %44, %24 : vector<32x64xi1>, vector<32x64xf32>
    %46 = tpu.concatenate %23, %1, %45 in 1 : vector<32x64xf32>, vector<32x64xf32>, vector<32x64xf32> -> vector<32x192xf32>
    %47 = arith.truncf %46 : vector<32x192xf32> to vector<32x192xbf16>
    %c0_14 = arith.constant 0 : index
    %c0_15 = arith.constant 0 : index
    %48 = vector.load %arg2[%c0_14, %c0_15] : memref<192x128xbf16, #tpu.memory_space<vmem>>, vector<192x128xbf16>
    %cst_16 = arith.constant dense<0.000000e+00> : vector<32x128xf32>
    %49 = tpu.matmul %47, %48, %cst_16 {dimension_numbers = #tpu.dot_dimension_numbers<[1], [0], [0], [1], [0, 0, 1, 1], [], []>} : vector<32x192xbf16>, vector<192x128xbf16>, vector<32x128xf32> -> vector<32x128xf32>
    %c0_17 = arith.constant 0 : index
    %c0_18 = arith.constant 0 : index
    %50 = vector.load %arg3[%c0_17, %c0_18] : memref<1x128xf32, #tpu.memory_space<vmem>>, vector<1x128xf32>
    %51 = vector.broadcast %50 : vector<1x128xf32> to vector<32x128xf32>
    %52 = arith.addf %49, %51 : vector<32x128xf32>
    %cst_19 = arith.constant 0.000000e+00 : f32
    %53 = vector.broadcast %cst_19 : f32 to vector<32x128xf32>
    %54 = arith.maximumf %52, %53 : vector<32x128xf32>
    %c1_i32_20 = arith.constant 1 : i32
    %55 = tpu.dynamic_rotate %54 by %c1_i32_20 dim 0 : vector<32x128xf32>, i32 -> vector<32x128xf32>
    %56 = tpu.iota {dimensions = array<i32: 0>} : vector<32x128xi32>
    %c16_i32_21 = arith.constant 16 : i32
    %c0_i32_22 = arith.constant 0 : i32
    %57 = arith.cmpi eq, %c16_i32_21, %c0_i32_22 : i32
    %c1_i32_23 = arith.constant 1 : i32
    %58 = arith.select %57, %c1_i32_23, %c16_i32_21 : i32
    %59 = vector.broadcast %58 : i32 to vector<32x128xi32>
    %60 = arith.remsi %56, %59 : vector<32x128xi32>
    %c0_i32_24 = arith.constant 0 : i32
    %61 = vector.broadcast %c0_i32_24 : i32 to vector<32x128xi32>
    %62 = arith.cmpi ne, %60, %61 : vector<32x128xi32>
    %c0_i32_25 = arith.constant 0 : i32
    %63 = vector.broadcast %c0_i32_25 : i32 to vector<32x128xi32>
    %64 = arith.cmpi slt, %60, %63 : vector<32x128xi32>
    %c0_i32_26 = arith.constant 0 : i32
    %65 = arith.cmpi slt, %58, %c0_i32_26 : i32
    %66 = vector.broadcast %65 : i1 to vector<32x128xi1>
    %67 = vector.broadcast %66 : vector<32x128xi1> to vector<32x128xi1>
    %68 = arith.xori %64, %67 : vector<32x128xi1>
    %69 = arith.andi %68, %62 : vector<32x128xi1>
    %70 = vector.broadcast %58 : i32 to vector<32x128xi32>
    %71 = arith.addi %60, %70 : vector<32x128xi32>
    %72 = arith.select %69, %71, %60 : vector<32x128xi1>, vector<32x128xi32>
    %c0_i32_27 = arith.constant 0 : i32
    %73 = vector.broadcast %c0_i32_27 : i32 to vector<32x128xi32>
    %74 = arith.cmpi eq, %72, %73 : vector<32x128xi32>
    %cst_28 = arith.constant 0.000000e+00 : f32
    %75 = vector.broadcast %cst_28 : f32 to vector<32x128xf32>
    %76 = arith.select %74, %75, %55 : vector<32x128xi1>, vector<32x128xf32>
    %c31_i32_29 = arith.constant 31 : i32
    %77 = tpu.dynamic_rotate %54 by %c31_i32_29 dim 0 : vector<32x128xf32>, i32 -> vector<32x128xf32>
    %78 = tpu.iota {dimensions = array<i32: 0>} : vector<32x128xi32>
    %c16_i32_30 = arith.constant 16 : i32
    %c0_i32_31 = arith.constant 0 : i32
    %79 = arith.cmpi eq, %c16_i32_30, %c0_i32_31 : i32
    %c1_i32_32 = arith.constant 1 : i32
    %80 = arith.select %79, %c1_i32_32, %c16_i32_30 : i32
    %81 = vector.broadcast %80 : i32 to vector<32x128xi32>
    %82 = arith.remsi %78, %81 : vector<32x128xi32>
    %c0_i32_33 = arith.constant 0 : i32
    %83 = vector.broadcast %c0_i32_33 : i32 to vector<32x128xi32>
    %84 = arith.cmpi ne, %82, %83 : vector<32x128xi32>
    %c0_i32_34 = arith.constant 0 : i32
    %85 = vector.broadcast %c0_i32_34 : i32 to vector<32x128xi32>
    %86 = arith.cmpi slt, %82, %85 : vector<32x128xi32>
    %c0_i32_35 = arith.constant 0 : i32
    %87 = arith.cmpi slt, %80, %c0_i32_35 : i32
    %88 = vector.broadcast %87 : i1 to vector<32x128xi1>
    %89 = vector.broadcast %88 : vector<32x128xi1> to vector<32x128xi1>
    %90 = arith.xori %86, %89 : vector<32x128xi1>
    %91 = arith.andi %90, %84 : vector<32x128xi1>
    %92 = vector.broadcast %80 : i32 to vector<32x128xi32>
    %93 = arith.addi %82, %92 : vector<32x128xi32>
    %94 = arith.select %91, %93, %82 : vector<32x128xi1>, vector<32x128xi32>
    %c15_i32_36 = arith.constant 15 : i32
    %95 = vector.broadcast %c15_i32_36 : i32 to vector<32x128xi32>
    %96 = arith.cmpi eq, %94, %95 : vector<32x128xi32>
    %cst_37 = arith.constant 0.000000e+00 : f32
    %97 = vector.broadcast %cst_37 : f32 to vector<32x128xf32>
    %98 = arith.select %96, %97, %77 : vector<32x128xi1>, vector<32x128xf32>
    %99 = tpu.concatenate %76, %54, %98 in 1 : vector<32x128xf32>, vector<32x128xf32>, vector<32x128xf32> -> vector<32x384xf32>
    %100 = arith.truncf %99 : vector<32x384xf32> to vector<32x384xbf16>
    %c0_38 = arith.constant 0 : index
    %c0_39 = arith.constant 0 : index
    %101 = vector.load %arg4[%c0_38, %c0_39] : memref<384x128xbf16, #tpu.memory_space<vmem>>, vector<384x128xbf16>
    %cst_40 = arith.constant dense<0.000000e+00> : vector<32x128xf32>
    %102 = tpu.matmul %100, %101, %cst_40 {dimension_numbers = #tpu.dot_dimension_numbers<[1], [0], [0], [1], [0, 0, 1, 1], [], []>} : vector<32x384xbf16>, vector<384x128xbf16>, vector<32x128xf32> -> vector<32x128xf32>
    %c0_41 = arith.constant 0 : index
    %c0_42 = arith.constant 0 : index
    %103 = vector.load %arg5[%c0_41, %c0_42] : memref<1x128xf32, #tpu.memory_space<vmem>>, vector<1x128xf32>
    %104 = vector.broadcast %103 : vector<1x128xf32> to vector<32x128xf32>
    %105 = arith.addf %102, %104 : vector<32x128xf32>
    %cst_43 = arith.constant 0.000000e+00 : f32
    %106 = vector.broadcast %cst_43 : f32 to vector<32x128xf32>
    %107 = arith.maximumf %105, %106 : vector<32x128xf32>
    %c120_i32 = arith.constant 120 : i32
    %108 = tpu.dynamic_rotate %107 by %c120_i32 dim 1 : vector<32x128xf32>, i32 -> vector<32x128xf32>
    %109 = arith.maximumf %107, %108 : vector<32x128xf32>
    %c31_i32_44 = arith.constant 31 : i32
    %110 = tpu.dynamic_rotate %109 by %c31_i32_44 dim 0 : vector<32x128xf32>, i32 -> vector<32x128xf32>
    %111 = tpu.iota {dimensions = array<i32: 0>} : vector<32x128xi32>
    %c16_i32_45 = arith.constant 16 : i32
    %c0_i32_46 = arith.constant 0 : i32
    %112 = arith.cmpi eq, %c16_i32_45, %c0_i32_46 : i32
    %c1_i32_47 = arith.constant 1 : i32
    %113 = arith.select %112, %c1_i32_47, %c16_i32_45 : i32
    %114 = vector.broadcast %113 : i32 to vector<32x128xi32>
    %115 = arith.remsi %111, %114 : vector<32x128xi32>
    %c0_i32_48 = arith.constant 0 : i32
    %116 = vector.broadcast %c0_i32_48 : i32 to vector<32x128xi32>
    %117 = arith.cmpi ne, %115, %116 : vector<32x128xi32>
    %c0_i32_49 = arith.constant 0 : i32
    %118 = vector.broadcast %c0_i32_49 : i32 to vector<32x128xi32>
    %119 = arith.cmpi slt, %115, %118 : vector<32x128xi32>
    %c0_i32_50 = arith.constant 0 : i32
    %120 = arith.cmpi slt, %113, %c0_i32_50 : i32
    %121 = vector.broadcast %120 : i1 to vector<32x128xi1>
    %122 = vector.broadcast %121 : vector<32x128xi1> to vector<32x128xi1>
    %123 = arith.xori %119, %122 : vector<32x128xi1>
    %124 = arith.andi %123, %117 : vector<32x128xi1>
    %125 = vector.broadcast %113 : i32 to vector<32x128xi32>
    %126 = arith.addi %115, %125 : vector<32x128xi32>
    %127 = arith.select %124, %126, %115 : vector<32x128xi1>, vector<32x128xi32>
    %c15_i32_51 = arith.constant 15 : i32
    %128 = vector.broadcast %c15_i32_51 : i32 to vector<32x128xi32>
    %129 = arith.cmpi eq, %127, %128 : vector<32x128xi32>
    %cst_52 = arith.constant 0.000000e+00 : f32
    %130 = vector.broadcast %cst_52 : f32 to vector<32x128xf32>
    %131 = arith.select %129, %130, %110 : vector<32x128xi1>, vector<32x128xf32>
    %132 = arith.maximumf %109, %131 : vector<32x128xf32>
    %133 = vector.shape_cast %132 : vector<32x128xf32> to vector<2x16x128xf32>
    %cst_53 = arith.constant 0.000000e+00 : f32
    %134 = vector.broadcast %cst_53 : f32 to vector<2x128xf32>
    %135 = vector.extract_strided_slice %133 {offsets = [0, 0, 0], sizes = [2, 1, 128], strides = [1, 1, 1]} : vector<2x16x128xf32> to vector<2x1x128xf32>
    %136 = vector.shape_cast %135 : vector<2x1x128xf32> to vector<2x128xf32>
    %137 = arith.truncf %136 : vector<2x128xf32> to vector<2x128xbf16>
    %c0_54 = arith.constant 0 : index
    %c0_55 = arith.constant 0 : index
    %c0_56 = arith.constant 0 : index
    %138 = vector.load %arg6[%c0_54, %c0_55, %c0_56] : memref<8x128x128xbf16, #tpu.memory_space<vmem>>, vector<1x128x128xbf16>
    %139 = vector.shape_cast %138 : vector<1x128x128xbf16> to vector<128x128xbf16>
    %cst_57 = arith.constant dense<0.000000e+00> : vector<2x128xf32>
    %140 = tpu.matmul %137, %139, %cst_57 {dimension_numbers = #tpu.dot_dimension_numbers<[1], [0], [0], [1], [0, 0, 1, 1], [], []>} : vector<2x128xbf16>, vector<128x128xbf16>, vector<2x128xf32> -> vector<2x128xf32>
    %141 = arith.addf %134, %140 : vector<2x128xf32>
    %142 = vector.extract_strided_slice %133 {offsets = [0, 2, 0], sizes = [2, 1, 128], strides = [1, 1, 1]} : vector<2x16x128xf32> to vector<2x1x128xf32>
    %143 = vector.shape_cast %142 : vector<2x1x128xf32> to vector<2x128xf32>
    %144 = arith.truncf %143 : vector<2x128xf32> to vector<2x128xbf16>
    %c1 = arith.constant 1 : index
    %c0_58 = arith.constant 0 : index
    %c0_59 = arith.constant 0 : index
    %145 = vector.load %arg6[%c1, %c0_58, %c0_59] : memref<8x128x128xbf16, #tpu.memory_space<vmem>>, vector<1x128x128xbf16>
    %146 = vector.shape_cast %145 : vector<1x128x128xbf16> to vector<128x128xbf16>
    %cst_60 = arith.constant dense<0.000000e+00> : vector<2x128xf32>
    %147 = tpu.matmul %144, %146, %cst_60 {dimension_numbers = #tpu.dot_dimension_numbers<[1], [0], [0], [1], [0, 0, 1, 1], [], []>} : vector<2x128xbf16>, vector<128x128xbf16>, vector<2x128xf32> -> vector<2x128xf32>
    %148 = arith.addf %141, %147 : vector<2x128xf32>
    %149 = vector.extract_strided_slice %133 {offsets = [0, 4, 0], sizes = [2, 1, 128], strides = [1, 1, 1]} : vector<2x16x128xf32> to vector<2x1x128xf32>
    %150 = vector.shape_cast %149 : vector<2x1x128xf32> to vector<2x128xf32>
    %151 = arith.truncf %150 : vector<2x128xf32> to vector<2x128xbf16>
    %c2 = arith.constant 2 : index
    %c0_61 = arith.constant 0 : index
    %c0_62 = arith.constant 0 : index
    %152 = vector.load %arg6[%c2, %c0_61, %c0_62] : memref<8x128x128xbf16, #tpu.memory_space<vmem>>, vector<1x128x128xbf16>
    %153 = vector.shape_cast %152 : vector<1x128x128xbf16> to vector<128x128xbf16>
    %cst_63 = arith.constant dense<0.000000e+00> : vector<2x128xf32>
    %154 = tpu.matmul %151, %153, %cst_63 {dimension_numbers = #tpu.dot_dimension_numbers<[1], [0], [0], [1], [0, 0, 1, 1], [], []>} : vector<2x128xbf16>, vector<128x128xbf16>, vector<2x128xf32> -> vector<2x128xf32>
    %155 = arith.addf %148, %154 : vector<2x128xf32>
    %156 = vector.extract_strided_slice %133 {offsets = [0, 6, 0], sizes = [2, 1, 128], strides = [1, 1, 1]} : vector<2x16x128xf32> to vector<2x1x128xf32>
    %157 = vector.shape_cast %156 : vector<2x1x128xf32> to vector<2x128xf32>
    %158 = arith.truncf %157 : vector<2x128xf32> to vector<2x128xbf16>
    %c3 = arith.constant 3 : index
    %c0_64 = arith.constant 0 : index
    %c0_65 = arith.constant 0 : index
    %159 = vector.load %arg6[%c3, %c0_64, %c0_65] : memref<8x128x128xbf16, #tpu.memory_space<vmem>>, vector<1x128x128xbf16>
    %160 = vector.shape_cast %159 : vector<1x128x128xbf16> to vector<128x128xbf16>
    %cst_66 = arith.constant dense<0.000000e+00> : vector<2x128xf32>
    %161 = tpu.matmul %158, %160, %cst_66 {dimension_numbers = #tpu.dot_dimension_numbers<[1], [0], [0], [1], [0, 0, 1, 1], [], []>} : vector<2x128xbf16>, vector<128x128xbf16>, vector<2x128xf32> -> vector<2x128xf32>
    %162 = arith.addf %155, %161 : vector<2x128xf32>
    %163 = vector.extract_strided_slice %133 {offsets = [0, 8, 0], sizes = [2, 1, 128], strides = [1, 1, 1]} : vector<2x16x128xf32> to vector<2x1x128xf32>
    %164 = vector.shape_cast %163 : vector<2x1x128xf32> to vector<2x128xf32>
    %165 = arith.truncf %164 : vector<2x128xf32> to vector<2x128xbf16>
    %c4 = arith.constant 4 : index
    %c0_67 = arith.constant 0 : index
    %c0_68 = arith.constant 0 : index
    %166 = vector.load %arg6[%c4, %c0_67, %c0_68] : memref<8x128x128xbf16, #tpu.memory_space<vmem>>, vector<1x128x128xbf16>
    %167 = vector.shape_cast %166 : vector<1x128x128xbf16> to vector<128x128xbf16>
    %cst_69 = arith.constant dense<0.000000e+00> : vector<2x128xf32>
    %168 = tpu.matmul %165, %167, %cst_69 {dimension_numbers = #tpu.dot_dimension_numbers<[1], [0], [0], [1], [0, 0, 1, 1], [], []>} : vector<2x128xbf16>, vector<128x128xbf16>, vector<2x128xf32> -> vector<2x128xf32>
    %169 = arith.addf %162, %168 : vector<2x128xf32>
    %170 = vector.extract_strided_slice %133 {offsets = [0, 10, 0], sizes = [2, 1, 128], strides = [1, 1, 1]} : vector<2x16x128xf32> to vector<2x1x128xf32>
    %171 = vector.shape_cast %170 : vector<2x1x128xf32> to vector<2x128xf32>
    %172 = arith.truncf %171 : vector<2x128xf32> to vector<2x128xbf16>
    %c5 = arith.constant 5 : index
    %c0_70 = arith.constant 0 : index
    %c0_71 = arith.constant 0 : index
    %173 = vector.load %arg6[%c5, %c0_70, %c0_71] : memref<8x128x128xbf16, #tpu.memory_space<vmem>>, vector<1x128x128xbf16>
    %174 = vector.shape_cast %173 : vector<1x128x128xbf16> to vector<128x128xbf16>
    %cst_72 = arith.constant dense<0.000000e+00> : vector<2x128xf32>
    %175 = tpu.matmul %172, %174, %cst_72 {dimension_numbers = #tpu.dot_dimension_numbers<[1], [0], [0], [1], [0, 0, 1, 1], [], []>} : vector<2x128xbf16>, vector<128x128xbf16>, vector<2x128xf32> -> vector<2x128xf32>
    %176 = arith.addf %169, %175 : vector<2x128xf32>
    %177 = vector.extract_strided_slice %133 {offsets = [0, 12, 0], sizes = [2, 1, 128], strides = [1, 1, 1]} : vector<2x16x128xf32> to vector<2x1x128xf32>
    %178 = vector.shape_cast %177 : vector<2x1x128xf32> to vector<2x128xf32>
    %179 = arith.truncf %178 : vector<2x128xf32> to vector<2x128xbf16>
    %c6 = arith.constant 6 : index
    %c0_73 = arith.constant 0 : index
    %c0_74 = arith.constant 0 : index
    %180 = vector.load %arg6[%c6, %c0_73, %c0_74] : memref<8x128x128xbf16, #tpu.memory_space<vmem>>, vector<1x128x128xbf16>
    %181 = vector.shape_cast %180 : vector<1x128x128xbf16> to vector<128x128xbf16>
    %cst_75 = arith.constant dense<0.000000e+00> : vector<2x128xf32>
    %182 = tpu.matmul %179, %181, %cst_75 {dimension_numbers = #tpu.dot_dimension_numbers<[1], [0], [0], [1], [0, 0, 1, 1], [], []>} : vector<2x128xbf16>, vector<128x128xbf16>, vector<2x128xf32> -> vector<2x128xf32>
    %183 = arith.addf %176, %182 : vector<2x128xf32>
    %184 = vector.extract_strided_slice %133 {offsets = [0, 14, 0], sizes = [2, 1, 128], strides = [1, 1, 1]} : vector<2x16x128xf32> to vector<2x1x128xf32>
    %185 = vector.shape_cast %184 : vector<2x1x128xf32> to vector<2x128xf32>
    %186 = arith.truncf %185 : vector<2x128xf32> to vector<2x128xbf16>
    %c7 = arith.constant 7 : index
    %c0_76 = arith.constant 0 : index
    %c0_77 = arith.constant 0 : index
    %187 = vector.load %arg6[%c7, %c0_76, %c0_77] : memref<8x128x128xbf16, #tpu.memory_space<vmem>>, vector<1x128x128xbf16>
    %188 = vector.shape_cast %187 : vector<1x128x128xbf16> to vector<128x128xbf16>
    %cst_78 = arith.constant dense<0.000000e+00> : vector<2x128xf32>
    %189 = tpu.matmul %186, %188, %cst_78 {dimension_numbers = #tpu.dot_dimension_numbers<[1], [0], [0], [1], [0, 0, 1, 1], [], []>} : vector<2x128xbf16>, vector<128x128xbf16>, vector<2x128xf32> -> vector<2x128xf32>
    %190 = arith.addf %183, %189 : vector<2x128xf32>
    %c0_79 = arith.constant 0 : index
    %c0_80 = arith.constant 0 : index
    %191 = vector.load %arg7[%c0_79, %c0_80] : memref<1x128xf32, #tpu.memory_space<vmem>>, vector<1x128xf32>
    %192 = vector.broadcast %191 : vector<1x128xf32> to vector<2x128xf32>
    %193 = arith.addf %190, %192 : vector<2x128xf32>
    %c0_81 = arith.constant 0 : index
    %c0_82 = arith.constant 0 : index
    %194 = vector.load %arg8[%c0_81, %c0_82] : memref<2x128xf32, #tpu.memory_space<vmem>>, vector<2x128xf32>
    tpu.vector_store %arg8[%c0_81, %c0_82], %193 {strides = array<i32>} : memref<2x128xf32, #tpu.memory_space<vmem>>, vector<2x128xf32>,
    return
  }
  func.func @transform_0(%arg0: i32) -> (i32, i32, i32) {
    %c0_i32 = arith.constant 0 : i32
    %c0_i32_0 = arith.constant 0 : i32
    %c0_i32_1 = arith.constant 0 : i32
    return %arg0, %c0_i32, %c0_i32_0 : i32, i32, i32
  }
  func.func @transform_1(%arg0: i32) -> (i32, i32) {
    %c0_i32 = arith.constant 0 : i32
    %c0_i32_0 = arith.constant 0 : i32
    %c0_i32_1 = arith.constant 0 : i32
    return %c0_i32, %c0_i32_0 : i32, i32
  }
  func.func @transform_2(%arg0: i32) -> (i32, i32) {
    %c0_i32 = arith.constant 0 : i32
    %c0_i32_0 = arith.constant 0 : i32
    %c0_i32_1 = arith.constant 0 : i32
    return %c0_i32, %c0_i32_0 : i32, i32
  }
  func.func @transform_3(%arg0: i32) -> (i32, i32) {
    %c0_i32 = arith.constant 0 : i32
    %c0_i32_0 = arith.constant 0 : i32
    %c0_i32_1 = arith.constant 0 : i32
    return %c0_i32, %c0_i32_0 : i32, i32
  }
  func.func @transform_4(%arg0: i32) -> (i32, i32) {
    %c0_i32 = arith.constant 0 : i32
    %c0_i32_0 = arith.constant 0 : i32
    %c0_i32_1 = arith.constant 0 : i32
    return %c0_i32, %c0_i32_0 : i32, i32
  }
  func.func @transform_5(%arg0: i32) -> (i32, i32, i32) {
    %c0_i32 = arith.constant 0 : i32
    %c0_i32_0 = arith.constant 0 : i32
    %c0_i32_1 = arith.constant 0 : i32
    %c0_i32_2 = arith.constant 0 : i32
    return %c0_i32, %c0_i32_0, %c0_i32_1 : i32, i32, i32
  }
  func.func @transform_6(%arg0: i32) -> (i32, i32) {
    %c0_i32 = arith.constant 0 : i32
    %c0_i32_0 = arith.constant 0 : i32
    %c0_i32_1 = arith.constant 0 : i32
    return %c0_i32, %c0_i32_0 : i32, i32
  }
  func.func @transform_7(%arg0: i32) -> (i32, i32) {
    %c0_i32 = arith.constant 0 : i32
    %c0_i32_0 = arith.constant 0 : i32
    return %arg0, %c0_i32 : i32, i32
  }
}

</mosaic_0001>

<bundles_post_ra>
// kernel: tpu_custom_call.1
= control target key start
LH: loop header
LB: loop body
LE: loop exit
PB: predicated region body
PF: predicated region fallthrough
CT: control target
= control target key end

     0   :  { %12 = vsyncpa [#allocation3], 0  ;;  %s2680_s0 = inlined_call_operand.hbm [shape: f32[2,16,64], index: 0, kind: input, shape index: {}]   ;;  %s2681_s1 = inlined_call_operand.hbm [shape: bf16[192,128], index: 1, kind: input, shape index: {}]   ;;  %s2682_s2 = inlined_call_operand.vmem [shape: f32[1,128], index: 2, kind: input, shape index: {}]   ;;  %s2683_s3 = inlined_call_operand.hbm [shape: bf16[384,128], index: 3, kind: input, shape index: {}]   ;;  %s2684_s4 = inlined_call_operand.vmem [shape: f32[1,128], index: 4, kind: input, shape index: {}]   ;;  %s2685_s5 = inlined_call_operand.hbm [shape: bf16[8,128,128], index: 5, kind: input, shape index: {}]   ;;  %s2686_s6 = inlined_call_operand.vmem [shape: f32[1,128], index: 6, kind: input, shape index: {}]   ;;  %s2687_s7 = inlined_call_operand.hbm [shape: f32[2,128], index: 7, kind: output, shape index: {}]  }
   0x1   :  { %13 = vsyncpa [#allocation6], 0 }
   0x2   :  { %14 = vsyncpa [#allocation9], 0 }
   0x3   :  { %15 = vsyncpa [#allocation4], 0  ;;  %s2305_s24 = smov [#allocation5]   ;;  %s2187_s28 = scalar_lea.hbm %s2681_s1, 1536 }
   0x4   :  { %s33_s25 = sshll.u32 %s2305_s24, 4  ;;  %p2188_p0 = scmp.ne.s32.totalorder %s2681_s1, %s2187_s28  ;;  %s34_s25 = int_to_ptr.vmem [resolvable:$true] %s33_s25 }
   0x5   :  { %p2191_p1 = scmp.lt.u32.totalorder %s2187_s28, %s2681_s1 }
   0x7   :  { %p2193_p2 = pnand %p2191_p1, %p2188_p0 }
   0x9   :  { %2196 = shalt.err (!%p2193_p2)
}
   0xa   :  { %s2197_s10 = scalar_lea.vmem %s34_s25, 1536  ;;  %p2202_p4 = scmp.lt.s32.totalorder %s34_s25, %s34_s25 }
   0xb   :  { %p2198_p3 = scmp.ne.s32.totalorder %s34_s25, %s2197_s10  ;;  %p2203_p5 = scmp.lt.s32.totalorder %s2197_s10, %s2197_s10 }
   0xd   :  { %p2204_p6 = por %p2203_p5, %p2202_p4 }
   0xf   :  { %p2205_p7 = pnand %p2204_p6, %p2198_p3 }
  0x11   :  { %2208 = shalt.err (!%p2205_p7)
}
  0x12   :  { %s2306_s11 = smov 64   ;;  %s2307_s12 = smov 4  }
  0x13   :  { %39 = dma.hbm_to_vmem [thread:$0]  %s2681_s1, 1536, %s34_s25, [#allocation6], %s2306_s11, %s2306_s11, %s2307_s12  }
  0x14   :  { %s2308_s15 = smov [#allocation2]   ;;  %s2209_s19 = scalar_lea.hbm %s2680_s0, 512 }
  0x15   :  { %s21_s16 = sshll.u32 %s2308_s15, 4  ;;  %p2210_p8 = scmp.ne.s32.totalorder %s2680_s0, %s2209_s19  ;;  %s22_s16 = int_to_ptr.vmem [resolvable:$true] %s21_s16 }
  0x16   :  { %p2213_p9 = scmp.lt.u32.totalorder %s2209_s19, %s2680_s0 }
  0x18   :  { %p2215_p10 = pnand %p2213_p9, %p2210_p8 }
  0x1a   :  { %2218 = shalt.err (!%p2215_p10)
}
  0x1b   :  { %s2219_s24 = scalar_lea.vmem %s22_s16, 512  ;;  %p2224_p12 = scmp.lt.s32.totalorder %s22_s16, %s22_s16 }
  0x1c   :  { %p2220_p11 = scmp.ne.s32.totalorder %s22_s16, %s2219_s24  ;;  %p2225_p13 = scmp.lt.s32.totalorder %s2219_s24, %s2219_s24 }
  0x1e   :  { %p2226_p0 = por %p2225_p13, %p2224_p12 }
  0x20   :  { %p2227_p1 = pnand %p2226_p0, %p2220_p11 }
  0x22   :  { %2230 = shalt.err (!%p2227_p1)
}
  0x23   :  { %s2309_s1 = smov 128   ;;  %s2310_s25 = smov 8  }
  0x24   :  { %27 = dma.hbm_to_vmem [thread:$0]  %s2680_s0, 512, %s22_s16, [#allocation3], %s2309_s1, %s2309_s1, %s2310_s25  }
  0x25   :  { %s2311_s28 = smov [#allocation7]   ;;  %s2312_s30 = smov [#allocation8]  }
  0x26   :  { %s47_s29 = sshll.u32 %s2311_s28, 4  ;;  %s61_s8 = sshll.u32 %s2312_s30, 4  ;;  %s48_s29 = int_to_ptr.vmem [resolvable:$true] %s47_s29  ;;  %s2386_s8 = int_to_ptr.vmem [resolvable:$true] %s61_s8 }
  0x27   :  { %s2231_s13 = scalar_lea.hbm %s2683_s3, 3072 }
  0x28   :  { %p2232_p2 = scmp.ne.s32.totalorder %s2683_s3, %s2231_s13  ;;  %p2235_p3 = scmp.lt.u32.totalorder %s2231_s13, %s2683_s3 }
  0x2a   :  { %p2237_p4 = pnand %p2235_p3, %p2232_p2 }
  0x2c   :  { %2240 = shalt.err (!%p2237_p4)
}
  0x2d   :  { %s2241_s0 = scalar_lea.vmem %s48_s29, 3072  ;;  %p2246_p6 = scmp.lt.s32.totalorder %s48_s29, %s48_s29 }
  0x2e   :  { %p2242_p5 = scmp.ne.s32.totalorder %s48_s29, %s2241_s0  ;;  %p2247_p7 = scmp.lt.s32.totalorder %s2241_s0, %s2241_s0 }
  0x30   :  { %p2248_p8 = por %p2247_p7, %p2246_p6 }
  0x32   :  { %p2249_p9 = pnand %p2248_p8, %p2242_p5 }
  0x34   :  { %2252 = shalt.err (!%p2249_p9)
}
  0x35   :  { %53 = dma.hbm_to_vmem [thread:$0]  %s2683_s3, 3072, %s48_s29, [#allocation6], %s2306_s11, %s2306_s11, %s2307_s12  }
  0x36   :  { %s2253_s22 = scalar_lea.hbm %s2685_s5, 8192 }
  0x37   :  { %p2254_p10 = scmp.ne.s32.totalorder %s2685_s5, %s2253_s22  ;;  %p2257_p11 = scmp.lt.u32.totalorder %s2253_s22, %s2685_s5 }
  0x39   :  { %p2259_p12 = pnand %p2257_p11, %p2254_p10 }
  0x3b   :  { %2262 = shalt.err (!%p2259_p12)
}
  0x3c   :  { %s2263_s26 = scalar_lea.vmem %s2386_s8, 8192  ;;  %p2268_p0 = scmp.lt.s32.totalorder %s2386_s8, %s2386_s8 }
  0x3d   :  { %p2264_p13 = scmp.ne.s32.totalorder %s2386_s8, %s2263_s26  ;;  %p2269_p1 = scmp.lt.s32.totalorder %s2263_s26, %s2263_s26 }
  0x3f   :  { %p2270_p2 = por %p2269_p1, %p2268_p0 }
  0x41   :  { %p2271_p3 = pnand %p2270_p2, %p2264_p13 }
  0x43   :  { %2274 = shalt.err (!%p2271_p3)
}
  0x44   :  { %67 = dma.hbm_to_vmem [thread:$0]  %s2685_s5, 8192, %s2386_s8, [#allocation9], %s2306_s11, %s2306_s11, %s2307_s12  }
  0x45   :  { %2297 = dma.done.wait [#allocation3], 512  }
  0x46   :  { %2298 = vsyncadd [#allocation3], 4294966784 }
  0x47   :  { %2299 = dma.done.wait [#allocation6], 4608  }
  0x48   :  { %2300 = vsyncadd [#allocation6], 4294962688 }
  0x49   :  { %2301 = dma.done.wait [#allocation9], 8192  }
  0x4a   :  { %2302 = vsyncadd [#allocation9], 4294959104  ;;  %v91_v0 = vlaneseq  ;;  %v2313_v1 = vmov 0   ;;  %v83_v5 = vld [vmem:[#allocation2] sm:$0xff]  ;;  %v84_v6 = vld [vmem:[#allocation2 + $0x8] sm:$0xff]  ;;  %vm190_vm3 = vcmask 523264  }
  0x4b   :  { %308 = vmatprep.subr.bf16.mxu0 %v2313_v1  ;;  %v85_v7 = vld [vmem:[#allocation2 + $0x10] sm:$0xff]  ;;  %v88_v10 = vrot.slane %v84_v6, 7  ;;  %v158_v11 = vrot.slane %v84_v6, 1  ;;  %v2067_v12 = vpack.i.bf16 %v84_v6, %v83_v5  ;;  %v87_v13 = vrot.slane %v83_v5, 7  ;;  %v86_v14 = vld [vmem:[#allocation2 + $0x18] sm:$0xff]  ;;  %v2087_v18 = vld [vmem:[#allocation5] sm:$0xff]  }
  0x4c   :  { %v2424_v2 = vshrl.u32 %v91_v0, 7  ;;  %v157_v15 = vrot.slane %v83_v5, 1  ;;  %v90_v16 = vrot.slane %v86_v14, 7  ;;  %v160_v17 = vrot.slane %v86_v14, 1  ;;  %309 = vmatpush1.bf16.msra.mxu0 %v2087_v18  ;;  %v2088_v23 = vld [vmem:[#allocation5 + $0x8] sm:$0xff]   ;;  %v2089_v35 = vld [vmem:[#allocation5 + $0x10] sm:$0xff]  }
  0x4d   :  { %2068 = vrot.lane.b32.xlu0 %v2067_v12, %s2306_s11  ;;  %v2072_v19 = vpack.i.bf16 %v86_v14, %v85_v7  ;;  %v89_v20 = vrot.slane %v85_v7, 7  ;;  %v159_v21 = vrot.slane %v85_v7, 1  ;;  %310 = vmatprep.subr.bf16.mxu0 %v2313_v1  ;;  %v2090_v38 = vld [vmem:[#allocation5 + $0x18] sm:$0xff]   ;;  %v2091_v39 = vld [vmem:[#allocation5 + $0x20] sm:$0xff]   ;;  %v2101_v42 = vld [vmem:[#allocation7 + $0x48] sm:$0xff]   ;;  %vm2314_vm8 = vmmov 1  }
  0x4e   :  { %v98_v3 = vadd.s32 8, %v2424_v2  ;;  %v100_v4 = vadd.s32 24, %v2424_v2  ;;  %vm161_vm0 = vcmp.lt.s32.totalorder %v2424_v2, 7  ;;  %vm93_vm1 = vcmp.lt.s32.totalorder %v2424_v2, 1  ;;  %v2099_v40 = vld [vmem:[#allocation7 + $0x40] sm:$0xff]   ;;  %v2102_v43 = vld [vmem:[#allocation7 + $0x8] sm:$0xff]  }
  0x4f   :  { %v2433_v22 = vsel %vm93_vm1, %v87_v13, %v88_v10  ;;  %v164_v24 = vsel %vm161_vm0, %v157_v15, %v158_v11  ;;  %v2443_v26 = vsel %vm93_vm1, %v90_v16, %v87_v13  ;;  %v165_v27 = vsel %vm161_vm0, %v160_v17, %v157_v15  ;;  %v2100_v41 = vld [vmem:[#allocation7] sm:$0xff]   ;;  %1763 = vmatprep.subr.bf16.mxu1 %v2099_v40  ;;  %v2103_v44 = vld [vmem:[#allocation7 + $0x50] sm:$0xff]   ;;  %v2092_v45 = vld [vmem:[#allocation5 + $0x28] sm:$0xff]   ;;  %s2318_s30 = smov [#allocation10]  }
  0x50   :  { %v112_v8 = vand.u32 15, %v98_v3  ;;  %v126_v9 = vand.u32 15, %v100_v4  ;;  %v163_v28 = vsel %vm161_vm0, %v158_v11, %v159_v21  ;;  %v162_v29 = vsel %vm161_vm0, %v159_v21, %v160_v17  ;;  %311 = vmatpush1.bf16.msra.mxu0 %v2088_v23  ;;  %1764 = vmatpush3.bf16.msra.mxu1 %v2100_v41  ;;  %v2104_v46 = vld [vmem:[#allocation7 + $0x10] sm:$0xff]   ;;  %v2105_v47 = vld [vmem:[#allocation7 + $0x58] sm:$0xff]   ;;  %v2095_v50 = vld [vmem:[#allocation5 + $0x40] sm:$0xff]   ;;  %s1631_s8 = sshll.u32 %s2318_s30, 4  ;;  %s1632_s8 = int_to_ptr.vmem [resolvable:$true] %s1631_s8 }
  0x51   :  { %v2454_v30 = vsel %vm93_vm1, %v89_v20, %v90_v16  ;;  %v2460_v32 = vsel %vm93_vm1, %v88_v10, %v89_v20  ;;  %2073 = vrot.lane.b32.xlu0 %v2072_v19, %s2306_s11  ;;  %312 = vmatprep.subr.bf16.mxu0 %v2313_v1  ;;  %v2093_v48 = vld [vmem:[#allocation5 + $0x30] sm:$0xff]   ;;  %v2094_v49 = vld [vmem:[#allocation5 + $0x38] sm:$0xff]   ;;  %v2096_v51 = vld [vmem:[#allocation5 + $0x48] sm:$0xff]   ;;  %v105_v54 = vand.u32 15, %v2424_v2  ;;  %v99_v55 = vadd.s32 16, %v2424_v2  ;;  %s2275_s9 = scalar_lea.vmem %s1632_s8, 32  ;;  %p2280_p5 = scmp.lt.s32.totalorder %s1632_s8, %s1632_s8 }
  0x52   :  { %vm2437_vm2 = vcmp.eq.s32.totalorder %v112_v8, 15  ;;  %vm2463_vm4 = vcmp.eq.s32.totalorder %v126_v9, 15  ;;  %1765 = vmatprep.subr.bf16.mxu1 %v2101_v42  ;;  %v2097_v52 = vld [vmem:[#allocation5 + $0x50] sm:$0xff]   ;;  %v2098_v53 = vld [vmem:[#allocation5 + $0x58] sm:$0xff]   ;;  %v2107_v11 = vld [vmem:[#allocation7 + $0x60] sm:$0xff]   ;;  %p2276_p4 = scmp.ne.s32.totalorder %s1632_s8, %s2275_s9  ;;  %p2281_p6 = scmp.lt.s32.totalorder %s2275_s9, %s2275_s9 }
  0x53   :  { %v171_v31 = vsel %vm2437_vm2, 0.0, %v163_v28  ;;  %v173_v36 = vsel %vm2463_vm4, 0.0, %v165_v27  ;;  %vm2482_vm5 = vcmp.eq.s32.totalorder %v105_v54, 0  ;;  %v119_v57 = vand.u32 15, %v99_v55  ;;  %v2106_v10 = vld [vmem:[#allocation7 + $0x18] sm:$0xff]   ;;  %v2108_v12 = vld [vmem:[#allocation7 + $0x20] sm:$0xff]   ;;  %vm1690_vm11 = vmneg %vm2437_vm2 }
  0x54   :  { %v196_v33 = vpack.c.bf16 %v171_v31, %v164_v24  ;;  %v198_v37 = vpack.c.bf16 %v173_v36, %v162_v29  ;;  %313 = vmatpush1.bf16.msra.mxu0 %v2089_v35  ;;  %1766 = vmatpush3.bf16.msra.mxu1 %v2102_v43  ;;  %v153_v59 = vsel %vm2482_vm5, 0.0, %v2443_v26  ;;  %v2109_v13 = vld [vmem:[#allocation7 + $0x68] sm:$0xff]   ;;  %v2111_v15 = vld [vmem:[#allocation7 + $0x70] sm:$0xff]   ;;  %v2113_v17 = vld [vmem:[#allocation7 + $0x78] sm:$0xff]   ;;  %p2282_p7 = por %p2281_p6, %p2280_p5 }
  0x55   :  { %314 = vmatprep.subr.bf16.mxu0 %v2313_v1  ;;  %1767 = vmatprep.subr.bf16.mxu1 %v2103_v44  ;;  %vm2489_vm6 = vcmp.eq.s32.totalorder %v119_v57, 0  ;;  %v2110_v14 = vld [vmem:[#allocation7 + $0x28] sm:$0xff]   ;;  %v2112_v16 = vld [vmem:[#allocation7 + $0x30] sm:$0xff]   ;;  %v2114_v18 = vld [vmem:[#allocation7 + $0x38] sm:$0xff]  }
  0x56   :  { %1655 = vmatprep.mubr.msk.bf16.mxu0 %vm190_vm3, %v196_v33  ;;  %v155_v4 = vsel %vm2489_vm6, 0.0, %v2460_v32  ;;  %v2115_v19 = vld [vmem:[#allocation7 + $0x80] sm:$0xff]   ;;  %vm1682_vm7 = vmneg %vm2482_vm5  ;;  %v2121_v62 = vld [vmem:[#allocation7 + $0xb0] sm:$0xff]   ;;  %p2283_p8 = pnand %p2282_p7, %p2276_p4 }
  0x57   :  { %v1642_v20 = vld [vmem:[%s2682_s2] ss:$0 sm:$0xff]  ;;  %vm1683_vm9 = vmpackc.low %vm2314_vm8, %vm1682_vm7 }
  0x58   :  { %315 = vmatpush1.bf16.msra.mxu0 %v2090_v38  ;;  %1768 = vmatpush3.bf16.msra.mxu1 %v2104_v46  ;;  %vm1686_vm10 = vmneg %vm2489_vm6 }
  0x59   :  { %316 = vmatprep.subr.bf16.mxu0 %v2313_v1  ;;  %1769 = vmatprep.subr.bf16.mxu1 %v2105_v47  ;;  %vm1687_vm12 = vmpackc.low %vm2314_vm8, %vm1686_vm10 }
  0x5a   :  { %vm1691_vm13 = vmpackc.low %vm1690_vm11, %vm2314_vm8 }
  0x5b   :  { %vm1694_vm14 = vmneg %vm2463_vm4 }
  0x5c   :  { %317 = vmatpush1.bf16.msra.mxu0 %v2091_v39  ;;  %1770 = vmatpush3.bf16.msra.mxu1 %v2106_v10  ;;  %vm1695_vm15 = vmpackc.low %vm1694_vm14, %vm2314_vm8  ;;  %v2127_v10 = vld [vmem:[#allocation8 + $0x50] sm:$0xff]  }
  0x5d   :  { %318 = vmatprep.subr.bf16.mxu0 %v2313_v1  ;;  %1771 = vmatprep.subr.bf16.mxu1 %v2107_v11  ;;  %v2128_v11 = vld [vmem:[#allocation8 + $0x10] sm:$0xff]  }
  0x60   :  { %319 = vmatpush1.bf16.msra.mxu0 %v2092_v45  ;;  %1772 = vmatpush3.bf16.msra.mxu1 %v2108_v12 }
  0x61   :  { %320 = vmatprep.subr.bf16.mxu0 %v2313_v1  ;;  %1773 = vmatprep.subr.bf16.mxu1 %v2109_v13 }
  0x64   :  { %321 = vmatpush1.bf16.msra.mxu0 %v2093_v48  ;;  %1774 = vmatpush3.bf16.msra.mxu1 %v2110_v14 }
  0x65   :  { %322 = vmatprep.subr.bf16.mxu0 %v2313_v1  ;;  %1775 = vmatprep.subr.bf16.mxu1 %v2111_v15 }
  0x68   :  { %323 = vmatpush1.bf16.msra.mxu0 %v2094_v49  ;;  %1776 = vmatpush3.bf16.msra.mxu1 %v2112_v16 }
  0x69   :  { %324 = vmatprep.subr.bf16.mxu0 %v2313_v1  ;;  %1777 = vmatprep.subr.bf16.mxu1 %v2113_v17 }
  0x6c   :  { %325 = vmatpush1.bf16.msra.mxu0 %v2095_v50  ;;  %1778 = vmatpush3.bf16.msra.mxu1 %v2114_v18 }
  0x6d   :  { %326 = vmatprep.subr.bf16.mxu0 %v2313_v1  ;;  %1873 = vmatprep.subr.bf16.mxu1 %v2115_v19 }
  0x70   :  { %327 = vmatpush1.bf16.msra.mxu0 %v2096_v51 }
  0x71   :  { %328 = vmatprep.subr.bf16.mxu0 %v2313_v1 }
  0x74   :  { %329 = vmatpush1.bf16.msra.mxu0 %v2097_v52 }
  0x75   :  { %330 = vmatprep.subr.bf16.mxu0 %v2313_v1 }
  0x78   :  { %331 = vmatpush1.bf16.msra.mxu0 %v2098_v53 }
  0xbf   :  { %v2069_v58 = vpop.permute.xlu0 %2068 }
  0xc0   :  { %v2071_v60 = vunpack.i.h.bf16 %v2069_v58  ;;  %v2070_v61 = vunpack.i.l.bf16 %v2069_v58 }
  0xc2   :  { %v191_v63 = vsel %vm190_vm3, %v153_v59, %v2070_v61  ;;  %v192_v0 = vsel %vm190_vm3, %v2433_v22, %v2071_v60  ;;  %v2116_v59 = vld [vmem:[#allocation7 + $0x88] sm:$0xff]  }
  0xc3   :  { %v195_v1 = vpack.c.bf16 %v192_v0, %v191_v63  ;;  %v2074_v3 = vpop.permute.xlu0 %2073  ;;  %v2117_v63 = vld [vmem:[#allocation7 + $0x90] sm:$0xff]   ;;  %v2118_v0 = vld [vmem:[#allocation7 + $0x98] sm:$0xff]  }
  0xc4   :  { %v2076_v5 = vunpack.i.h.bf16 %v2074_v3  ;;  %v2075_v6 = vunpack.i.l.bf16 %v2074_v3  ;;  %v2120_v3 = vld [vmem:[#allocation7 + $0xa8] sm:$0xff]  }
  0xc5   :  { %341 = vmatmul.mubr.bf16.vlgmr.msra.gmra.mrb[0].mxu0 %v195_v1  ;;  %v2119_v1 = vld [vmem:[#allocation7 + $0xa0] sm:$0xff]  }
  0xc6   :  { %1656 = vmatprep.mubr.msk.bf16.mxu0 %vm190_vm3, %v198_v37  ;;  %v193_v7 = vsel %vm190_vm3, %v155_v4, %v2075_v6  ;;  %v194_v8 = vsel %vm190_vm3, %v2454_v30, %v2076_v5  ;;  %v2122_v4 = vld [vmem:[#allocation7 + $0xb8] sm:$0xff]   ;;  %v2123_v5 = vld [vmem:[#allocation8 + $0x40] sm:$0xff]   ;;  %vm761_vm3 = vcmask 1041409  }
  0xc7   :  { %v197_v9 = vpack.c.bf16 %v194_v8, %v193_v7  ;;  %v2124_v6 = vld [vmem:[#allocation8] sm:$0xff]   ;;  %v2315_v7 = vmov 0.0   ;;  %v2125_v8 = vld [vmem:[#allocation8 + $0x48] sm:$0xff]  }
  0xc8   :  { %1893 = vmatprep.subr.bf16.mxu0 %v2315_v7 }
  0xc9   :  { %1894 = vmatpush3.bf16.msra.mxu0 %v2123_v5 }
  0xca   :  { %1895 = vmatprep.subr.bf16.mxu0 %v2315_v7 }
  0xcd   :  { %349 = vmatmul.mubr.bf16.gmra.mrb[4].mxu0 %v197_v9  ;;  %v2126_v9 = vld [vmem:[#allocation8 + $0x8] sm:$0xff]  }
  0xce   :  { %1896 = vmatpush3.bf16.msra.mxu0 %v2125_v8 }
  0xcf   :  { %1897 = vmatprep.subr.bf16.mxu0 %v2315_v7 }
  0xd2   :  { %1898 = vmatpush3.bf16.msra.mxu0 %v2127_v10 }
  0xd3   :  { %1899 = vmatprep.subr.bf16.mxu0 %v2315_v7 }
 0x198   :  { %v342_v21 = vpop.f32.mrb[0].mxu0 }
 0x199   :  { %v343_v22 = vadd.f32 %v1642_v20, %v342_v21  ;;  %v344_v23 = vpop.f32.mrb[1].mxu0 }
 0x19a   :  { %v345_v24 = vpop.f32.mrb[2].mxu0 }
 0x19b   :  { %v357_v26 = vmax.f32 %v343_v22, 0.0  ;;  %v346_v27 = vadd.f32 %v1642_v20, %v345_v24  ;;  %v347_v28 = vpop.f32.mrb[3].mxu0  ;;  %v1657_v24 = vld [vmem:[%s2684_s4] ss:$0 sm:$0xff]  ;;  %s2316_s4 = smov 120  }
 0x19d   :  { %v358_v29 = vmax.f32 %v346_v27, 0.0  ;;  %v361_v30 = vrot.slane %v357_v26, 7  ;;  %v373_v31 = vrot.slane %v357_v26, 1  ;;  %v2130_v27 = vld [vmem:[#allocation8 + $0x18] sm:$0xff]  }
 0x19f   :  { %v362_v32 = vrot.slane %v358_v29, 7  ;;  %v374_v33 = vrot.slane %v358_v29, 1  ;;  %v386_v35 = vpack.c.bf16 %v358_v29, %v357_v26  ;;  %v2129_v26 = vld [vmem:[#allocation8 + $0x58] sm:$0xff]  }
 0x1a0   :  { %v350_v36 = vpop.f32.mrb[4].mxu0  ;;  %1900 = vmatpush3.bf16.msra.mxu0 %v2129_v26 }
 0x1a1   :  { %v351_v37 = vadd.f32 %v1642_v20, %v350_v36  ;;  %v352_v38 = vpop.f32.mrb[5].mxu0  ;;  %622 = vmatprep.mubr.bf16.mxu1 %v386_v35  ;;  %v367_v39 = vsel %vm93_vm1, %v361_v30, %v362_v32  ;;  %v379_v40 = vsel %vm161_vm0, %v373_v31, %v374_v33  ;;  %1901 = vmatprep.subr.bf16.mxu0 %v2315_v7 }
 0x1a2   :  { %v353_v41 = vpop.f32.mrb[6].mxu0  ;;  %v2131_v38 = vld [vmem:[#allocation8 + $0x60] sm:$0xff]  }
 0x1a3   :  { %v359_v42 = vmax.f32 %v351_v37, 0.0  ;;  %v354_v43 = vadd.f32 %v1642_v20, %v353_v41  ;;  %v355_v44 = vpop.f32.mrb[7].mxu0 }
 0x1a4   :  { %1902 = vmatpush3.bf16.msra.mxu0 %v2131_v38 }
 0x1a5   :  { %v363_v45 = vrot.slane %v359_v42, 7  ;;  %v375_v46 = vrot.slane %v359_v42, 1  ;;  %v360_v47 = vmax.f32 %v354_v43, 0.0  ;;  %1903 = vmatprep.subr.bf16.mxu0 %v2315_v7 }
 0x1a7   :  { %v364_v48 = vrot.slane %v360_v47, 7  ;;  %v376_v49 = vrot.slane %v360_v47, 1  ;;  %v389_v50 = vpack.c.bf16 %v360_v47, %v359_v42  ;;  %v366_v51 = vsel %vm93_vm1, %v362_v32, %v363_v45 }
 0x1a8   :  { %v378_v52 = vsel %vm161_vm0, %v374_v33, %v375_v46 }
 0x1a9   :  { %v377_v53 = vsel %vm161_vm0, %v375_v46, %v376_v49  ;;  %v380_v54 = vsel %vm161_vm0, %v376_v49, %v373_v31  ;;  %v368_v55 = vsel %vm93_vm1, %v364_v48, %v361_v30  ;;  %v365_v56 = vsel %vm93_vm1, %v363_v45, %v364_v48  ;;  %v2133_v45 = vld [vmem:[#allocation8 + $0x68] sm:$0xff]  }
 0x1aa   :  { %v1696_v57 = vpack.c.bf16 %v380_v54, %v377_v53  ;;  %v1684_v58 = vpack.c.bf16 %v367_v39, %v368_v55  ;;  %v1688_v60 = vpack.c.bf16 %v365_v56, %v366_v51  ;;  %v1692_v61 = vpack.c.bf16 %v378_v52, %v379_v40  ;;  %v2132_v39 = vld [vmem:[#allocation8 + $0x20] sm:$0xff]   ;;  %v2134_v46 = vld [vmem:[#allocation8 + $0x28] sm:$0xff]   ;;  %1904 = vmatpush3.bf16.msra.mxu0 %v2133_v45  ;;  %v2136_v51 = vld [vmem:[#allocation8 + $0x30] sm:$0xff]  }
 0x1ab   :  { %1905 = vmatprep.subr.bf16.mxu0 %v2315_v7  ;;  %v2137_v53 = vld [vmem:[#allocation8 + $0x78] sm:$0xff]   ;;  %vm2317_vm1 = vmmov 0  }
 0x1ac   :  { %1685 = vmatmul.mubr.msk.bf16.vlgmr.msra.gmra.mrb[0].mxu1 %vm1683_vm9, %v1684_v58  ;;  %v2138_v54 = vld [vmem:[#allocation8 + $0x38] sm:$0xff]   ;;  %1909 = vmatprep.mubr.msk.bf16.mxu0 %vm2317_vm1, %v2315_v7 }
 0x1ad   :  { %1874 = vmatpush3.bf16.msra.mxu1 %v2115_v19  ;;  %630 = vmatprep.mubr.bf16.mxu1 %v389_v50  ;;  %v2135_v50 = vld [vmem:[#allocation8 + $0x70] sm:$0xff]  }
 0x1ae   :  { %1875 = vmatprep.subr.bf16.mxu1 %v2116_v59  ;;  %1906 = vmatpush3.bf16.msra.mxu0 %v2135_v50  ;;  %v2147_v50 = vld [vmem:[#allocation8 + $0xa0] sm:$0xff]  }
 0x1af   :  { %1907 = vmatprep.subr.bf16.mxu0 %v2315_v7 }
 0x1b1   :  { %1876 = vmatpush3.bf16.msra.mxu1 %v2116_v59 }
 0x1b2   :  { %1877 = vmatprep.subr.bf16.mxu1 %v2117_v63  ;;  %1908 = vmatpush3.bf16.msra.mxu0 %v2137_v53  ;;  %v2150_v53 = vld [vmem:[#allocation8 + $0xe8] sm:$0xff]  }
 0x1b3   :  { %1933 = vmatprep.subr.bf16.mxu0 %v2315_v7 }
 0x1b4   :  { %1689 = vmatmul.mubr.msk.bf16.gmra.mrb[4].mxu1 %vm1687_vm12, %v1688_v60 }
 0x1b5   :  { %1878 = vmatpush3.bf16.msra.mxu1 %v2117_v63  ;;  %1889 = vmatprep.mubr.msk.bf16.mxu1 %vm1691_vm13, %v1692_v61 }
 0x1b6   :  { %1879 = vmatprep.subr.bf16.mxu1 %v2118_v0 }
 0x1b9   :  { %1880 = vmatpush3.bf16.msra.mxu1 %v2118_v0 }
 0x1ba   :  { %1881 = vmatprep.subr.bf16.mxu1 %v2119_v1 }
 0x1bd   :  { %1882 = vmatpush3.bf16.msra.mxu1 %v2119_v1 }
 0x1be   :  { %1883 = vmatprep.subr.bf16.mxu1 %v2120_v3 }
 0x1c1   :  { %1884 = vmatpush3.bf16.msra.mxu1 %v2120_v3 }
 0x1c2   :  { %1885 = vmatprep.subr.bf16.mxu1 %v2121_v62 }
 0x1c5   :  { %1886 = vmatpush3.bf16.msra.mxu1 %v2121_v62 }
 0x1c6   :  { %1887 = vmatprep.subr.bf16.mxu1 %v2122_v4 }
 0x1c9   :  { %1888 = vmatpush3.bf16.msra.mxu1 %v2122_v4 }
 0x1ca   :  { %1913 = vmatprep.subr.bf16.mxu1 %v2315_v7 }
 0x1cc   :  { %1890 = vmatmul.mubr.msk.bf16.vlgmr.msra.gmra.mrb[8].mxu1 %vm1695_vm15, %v1696_v57 }
 0x1cd   :  { %1914 = vmatpush3.bf16.msra.mxu1 %v2124_v6  ;;  %1929 = vmatprep.mubr.msk.bf16.mxu1 %vm2317_vm1, %v2315_v7 }
 0x1ce   :  { %1915 = vmatprep.subr.bf16.mxu1 %v2315_v7 }
 0x1d1   :  { %1916 = vmatpush3.bf16.msra.mxu1 %v2126_v9 }
 0x1d2   :  { %1917 = vmatprep.subr.bf16.mxu1 %v2315_v7 }
 0x1d5   :  { %1918 = vmatpush3.bf16.msra.mxu1 %v2128_v11 }
 0x1d6   :  { %1919 = vmatprep.subr.bf16.mxu1 %v2315_v7 }
 0x1d9   :  { %1920 = vmatpush3.bf16.msra.mxu1 %v2130_v27 }
 0x1da   :  { %1921 = vmatprep.subr.bf16.mxu1 %v2315_v7 }
 0x1dd   :  { %1922 = vmatpush3.bf16.msra.mxu1 %v2132_v39 }
 0x1de   :  { %1923 = vmatprep.subr.bf16.mxu1 %v2315_v7 }
 0x1e1   :  { %1924 = vmatpush3.bf16.msra.mxu1 %v2134_v46  ;;  %v2143_v46 = vld [vmem:[#allocation8 + $0x90] sm:$0xff]  }
 0x1e2   :  { %1925 = vmatprep.subr.bf16.mxu1 %v2315_v7 }
 0x1e5   :  { %1926 = vmatpush3.bf16.msra.mxu1 %v2136_v51  ;;  %v2148_v51 = vld [vmem:[#allocation8 + $0xe0] sm:$0xff]  }
 0x1e6   :  { %1927 = vmatprep.subr.bf16.mxu1 %v2315_v7 }
 0x1e9   :  { %1928 = vmatpush3.bf16.msra.mxu1 %v2138_v54  ;;  %v2151_v54 = vld [vmem:[#allocation8 + $0xb0] sm:$0xff]  }
 0x1ea   :  { %1953 = vmatprep.subr.bf16.mxu1 %v2315_v7 }
 0x27f   :  { %v1779_v12 = vpop.f32.mrb[0].mxu1 }
 0x280   :  { %v1780_v13 = vpop.f32.mrb[1].mxu1 }
 0x281   :  { %v1781_v14 = vadd.f32 %v1780_v13, %v1779_v12  ;;  %v1782_v15 = vpop.f32.mrb[2].mxu1 }
 0x282   :  { %v1783_v16 = vpop.f32.mrb[3].mxu1 }
 0x283   :  { %v1784_v17 = vadd.f32 %v1783_v16, %v1782_v15  ;;  %v625_v30 = vadd.f32 %v1781_v14, %v1657_v24 }
 0x285   :  { %v628_v37 = vadd.f32 %v1784_v17, %v1657_v24 }
 0x287   :  { %v1785_v18 = vpop.f32.mrb[4].mxu1 }
 0x288   :  { %v1786_v19 = vpop.f32.mrb[5].mxu1 }
 0x289   :  { %v1787_v20 = vadd.f32 %v1786_v19, %v1785_v18  ;;  %v1788_v21 = vpop.f32.mrb[6].mxu1 }
 0x28a   :  { %v1789_v22 = vpop.f32.mrb[7].mxu1 }
 0x28b   :  { %v1790_v23 = vadd.f32 %v1789_v22, %v1788_v21  ;;  %v633_v28 = vadd.f32 %v1787_v20, %v1657_v24 }
 0x28d   :  { %v636_v33 = vadd.f32 %v1790_v23, %v1657_v24 }
 0x29f   :  { %v1891_v29 = vpop.f32.mrb[8].mxu1 }
 0x2a0   :  { %v682_v31 = vadd.f32 %v1891_v29, %v633_v28  ;;  %v673_v32 = vpop.f32.mrb[9].mxu1 }
 0x2a1   :  { %v674_v35 = vadd.f32 %v673_v32, %v625_v30  ;;  %v1892_v36 = vpop.f32.mrb[10].mxu1  ;;  %v2140_v32 = vld [vmem:[#allocation8 + $0xc0] sm:$0xff]  }
 0x2a2   :  { %v685_v40 = vadd.f32 %v1892_v36, %v636_v33  ;;  %v676_v41 = vpop.f32.mrb[11].mxu1  ;;  %v690_v49 = vmax.f32 %v682_v31, 0.0  ;;  %v2139_v31 = vld [vmem:[#allocation8 + $0x80] sm:$0xff]  }
 0x2a3   :  { %v677_v42 = vadd.f32 %v676_v41, %v628_v37  ;;  %v688_v43 = vmax.f32 %v674_v35, 0.0 }
 0x2a4   :  { %v691_v47 = vmax.f32 %v685_v40, 0.0 }
 0x2a5   :  { %v689_v44 = vmax.f32 %v677_v42, 0.0  ;;  %v2141_v42 = vld [vmem:[#allocation8 + $0x88] sm:$0xff]  }
 0x2a6   :  { %v2082_v52 = vpack.i.bf16 %v691_v47, %v690_v49 }
 0x2a7   :  { %v2077_v48 = vpack.i.bf16 %v689_v44, %v688_v43 }
 0x2a9   :  { %2078 = vrot.lane.b32.xlu1 %v2077_v48, %s2316_s4  ;;  %v2145_v48 = vld [vmem:[#allocation8 + $0x98] sm:$0xff]  }
 0x2ad   :  { %2083 = vrot.lane.b32.xlu1 %v2082_v52, %s2316_s4  ;;  %v2149_v52 = vld [vmem:[#allocation8 + $0xa8] sm:$0xff]  }
 0x31b   :  { %v2079_v55 = vpop.permute.xlu1 %2078 }
 0x31c   :  { %v2081_v56 = vunpack.i.h.bf16 %v2079_v55  ;;  %v2080_v57 = vunpack.i.l.bf16 %v2079_v55  ;;  %v2152_v55 = vld [vmem:[#allocation8 + $0xf0] sm:$0xff]  }
 0x31e   :  { %v701_v58 = vmax.f32 %v689_v44, %v2081_v56  ;;  %v700_v59 = vmax.f32 %v688_v43, %v2080_v57  ;;  %v2142_v43 = vld [vmem:[#allocation8 + $0xc8] sm:$0xff]  }
 0x31f   :  { %v2084_v60 = vpop.permute.xlu1 %2083 }
 0x320   :  { %v705_v61 = vrot.slane %v701_v58, 1  ;;  %v704_v63 = vrot.slane %v700_v59, 1  ;;  %v2086_v0 = vunpack.i.h.bf16 %v2084_v60  ;;  %v2085_v1 = vunpack.i.l.bf16 %v2084_v60 }
 0x322   :  { %v710_v3 = vsel %vm161_vm0, %v704_v63, %v705_v61  ;;  %v703_v62 = vmax.f32 %v691_v47, %v2086_v0  ;;  %v702_v4 = vmax.f32 %v690_v49, %v2085_v1  ;;  %v2144_v47 = vld [vmem:[#allocation8 + $0xd0] sm:$0xff]   ;;  %v2146_v49 = vld [vmem:[#allocation8 + $0xd8] sm:$0xff]   ;;  %v2155_v1 = vld [vmem:[#allocation8 + $0x100] sm:$0xff]  }
 0x323   :  { %v716_v5 = vmax.f32 %v700_v59, %v710_v3  ;;  %v2154_v59 = vld [vmem:[#allocation8 + $0xf8] sm:$0xff]   ;;  %v2156_v3 = vld [vmem:[#allocation8 + $0x140] sm:$0xff]  }
 0x324   :  { %v707_v6 = vrot.slane %v703_v62, 1  ;;  %v706_v8 = vrot.slane %v702_v4, 1 }
 0x325   :  { %v720_v9 = vpack.c.bf16 %v716_v5, %v716_v5  ;;  %v2157_v5 = vld [vmem:[#allocation8 + $0x108] sm:$0xff]  }
 0x326   :  { %v708_v10 = vsel %vm161_vm0, %v706_v8, %v707_v6  ;;  %v709_v11 = vsel %vm161_vm0, %v705_v61, %v706_v8  ;;  %v711_v12 = vsel %vm161_vm0, %v707_v6, %v704_v63  ;;  %v2158_v6 = vld [vmem:[#allocation8 + $0x148] sm:$0xff]   ;;  %v2159_v8 = vld [vmem:[#allocation8 + $0x110] sm:$0xff]  }
 0x327   :  { %v713_v13 = vsel %vm2437_vm2, 0.0, %v709_v11  ;;  %v715_v14 = vsel %vm2463_vm4, 0.0, %v711_v12  ;;  %v718_v15 = vmax.f32 %v702_v4, %v708_v10  ;;  %v2571_v18 = vunpack.c.l.b16 %v720_v9  ;;  %v2160_v9 = vld [vmem:[#allocation8 + $0x150] sm:$0xff]   ;;  %v2161_v10 = vld [vmem:[#allocation8 + $0x118] sm:$0xff]   ;;  %v2163_v12 = vld [vmem:[#allocation8 + $0x120] sm:$0xff]  }
 0x328   :  { %v717_v16 = vmax.f32 %v701_v58, %v713_v13  ;;  %v719_v17 = vmax.f32 %v703_v62, %v715_v14  ;;  %v2153_v58 = vld [vmem:[#allocation8 + $0xb8] sm:$0xff]   ;;  %v2164_v13 = vld [vmem:[#allocation8 + $0x160] sm:$0xff]   ;;  %v2165_v14 = vld [vmem:[#allocation8 + $0x128] sm:$0xff]  }
 0x329   :  { %v721_v19 = vpack.c.bf16 %v718_v15, %v718_v15  ;;  %v759_v2 = vrot.slane %v2571_v18, 2  ;;  %v962_v60 = vrot.slane %v2571_v18, 4  ;;  %v1073_v61 = vrot.slane %v2571_v18, 6  ;;  %v2162_v11 = vld [vmem:[#allocation8 + $0x158] sm:$0xff]   ;;  %v2166_v15 = vld [vmem:[#allocation8 + $0x168] sm:$0xff]  }
 0x32a   :  { %v1167_v20 = vpack.c.bf16 %v717_v16, %v717_v16  ;;  %v1168_v21 = vpack.c.bf16 %v719_v17, %v719_v17  ;;  %v2167_v16 = vld [vmem:[#allocation8 + $0x130] sm:$0xff]  }
 0x32b   :  { %v2573_v22 = vunpack.c.l.b16 %v721_v19  ;;  %v2168_v17 = vld [vmem:[#allocation8 + $0x170] sm:$0xff]   ;;  %v2170_v19 = vld [vmem:[#allocation8 + $0x178] sm:$0xff]  }
 0x32c   :  { %v1188_v23 = vunpack.c.l.b16 %v1167_v20  ;;  %v1189_v24 = vunpack.c.l.b16 %v1168_v21  ;;  %v2171_v20 = vld [vmem:[#allocation8 + $0x180] sm:$0xff]  }
 0x32d   :  { %v760_v25 = vrot.slane %v2573_v22, 1  ;;  %v853_v34 = vrot.slane %v2573_v22, 7  ;;  %v963_v56 = vrot.slane %v2573_v22, 3  ;;  %v1074_v57 = vrot.slane %v2573_v22, 5  ;;  %v2172_v21 = vld [vmem:[#allocation8 + $0x1c0] sm:$0xff]  }
 0x32e   :  { %v1190_v26 = vrot.slane %v1189_v24, 7  ;;  %v1300_v27 = vrot.slane %v1188_v23, 2  ;;  %v1301_v28 = vrot.slane %v1189_v24, 1  ;;  %v1411_v33 = vrot.slane %v1188_v23, 4 }
 0x32f   :  { %v762_v29 = vsel %vm761_vm3, %v760_v25, %v759_v2  ;;  %v854_v30 = vsel %vm761_vm3, %v853_v34, %v2571_v18  ;;  %v1412_v39 = vrot.slane %v1189_v24, 3  ;;  %v1522_v40 = vrot.slane %v1188_v23, 6  ;;  %v2169_v18 = vld [vmem:[#allocation8 + $0x138] sm:$0xff]   ;;  %v2174_v2 = vld [vmem:[#allocation8 + $0x1c8] sm:$0xff]   ;;  %v2175_v25 = vld [vmem:[#allocation8 + $0x190] sm:$0xff]  }
 0x330   :  { %v763_v35 = vpack.c.b16 %v762_v29, %v762_v29  ;;  %v855_v36 = vpack.c.b16 %v854_v30, %v854_v30  ;;  %v2582_v37 = vsel %vm761_vm3, %v1190_v26, %v1188_v23  ;;  %v2585_v38 = vsel %vm761_vm3, %v1301_v28, %v1300_v27  ;;  %v2176_v34 = vld [vmem:[#allocation8 + $0x1d0] sm:$0xff]   ;;  %v2177_v26 = vld [vmem:[#allocation8 + $0x198] sm:$0xff]   ;;  %v2179_v28 = vld [vmem:[#allocation8 + $0x1a0] sm:$0xff]  }
 0x331   :  { %v1523_v41 = vrot.slane %v1189_v24, 5  ;;  %v2588_v44 = vsel %vm761_vm3, %v1412_v39, %v1411_v33  ;;  %v964_v63 = vsel %vm761_vm3, %v963_v56, %v962_v60  ;;  %v1075_v0 = vsel %vm761_vm3, %v1074_v57, %v1073_v61  ;;  %v2173_v24 = vld [vmem:[#allocation8 + $0x188] sm:$0xff]   ;;  %v2178_v27 = vld [vmem:[#allocation8 + $0x1d8] sm:$0xff]   ;;  %v2180_v29 = vld [vmem:[#allocation8 + $0x1e0] sm:$0xff]  }
 0x332   :  { %1910 = vmatmul.mubr.bf16.vlgmr.msra.gmra.mrb[8].mxu0 %v763_v35  ;;  %1930 = vmatmul.mubr.bf16.vlgmr.msra.gmra.mrb[12].mxu1 %v855_v36  ;;  %v965_v62 = vpack.c.b16 %v964_v63, %v964_v63  ;;  %v1076_v4 = vpack.c.b16 %v1075_v0, %v1075_v0  ;;  %v1192_v22 = vpack.c.b16 %v2582_v37, %v2582_v37  ;;  %v2181_v30 = vld [vmem:[#allocation8 + $0x1a8] sm:$0xff]   ;;  %v2184_v33 = vld [vmem:[#allocation8 + $0x1f0] sm:$0xff]   ;;  %v2185_v35 = vld [vmem:[#allocation8 + $0x1b8] sm:$0xff]  }
 0x333   :  { %1934 = vmatpush3.bf16.msra.mxu0 %v2139_v31  ;;  %1954 = vmatpush3.bf16.msra.mxu1 %v2140_v32  ;;  %v2593_v45 = vsel %vm761_vm3, %v1523_v41, %v1522_v40  ;;  %v1303_v23 = vpack.c.b16 %v2585_v38, %v2585_v38  ;;  %v2182_v31 = vld [vmem:[#allocation8 + $0x1e8] sm:$0xff]   ;;  %v2183_v32 = vld [vmem:[#allocation8 + $0x1b0] sm:$0xff]   ;;  %v2186_v36 = vld [vmem:[#allocation8 + $0x1f8] sm:$0xff]   ;;  %v1414_v37 = vpack.c.b16 %v2588_v44, %v2588_v44 }
 0x334   :  { %1935 = vmatprep.subr.bf16.mxu0 %v2315_v7  ;;  %1955 = vmatprep.subr.bf16.mxu1 %v2315_v7  ;;  %v1525_v38 = vpack.c.b16 %v2593_v45, %v2593_v45 }
 0x335   :  { %1949 = vmatprep.mubr.msk.bf16.mxu0 %vm2317_vm1, %v2315_v7  ;;  %1969 = vmatprep.mubr.msk.bf16.mxu1 %vm2317_vm1, %v2315_v7 }
 0x337   :  { %1936 = vmatpush3.bf16.msra.mxu0 %v2141_v42  ;;  %1956 = vmatpush3.bf16.msra.mxu1 %v2142_v43 }
 0x338   :  { %1937 = vmatprep.subr.bf16.mxu0 %v2315_v7  ;;  %1957 = vmatprep.subr.bf16.mxu1 %v2315_v7 }
 0x33b   :  { %1938 = vmatpush3.bf16.msra.mxu0 %v2143_v46  ;;  %1958 = vmatpush3.bf16.msra.mxu1 %v2144_v47 }
 0x33c   :  { %1939 = vmatprep.subr.bf16.mxu0 %v2315_v7  ;;  %1959 = vmatprep.subr.bf16.mxu1 %v2315_v7 }
 0x33f   :  { %1940 = vmatpush3.bf16.msra.mxu0 %v2145_v48  ;;  %1960 = vmatpush3.bf16.msra.mxu1 %v2146_v49 }
 0x340   :  { %1941 = vmatprep.subr.bf16.mxu0 %v2315_v7  ;;  %1961 = vmatprep.subr.bf16.mxu1 %v2315_v7 }
 0x343   :  { %1942 = vmatpush3.bf16.msra.mxu0 %v2147_v50  ;;  %1962 = vmatpush3.bf16.msra.mxu1 %v2148_v51 }
 0x344   :  { %1943 = vmatprep.subr.bf16.mxu0 %v2315_v7  ;;  %1963 = vmatprep.subr.bf16.mxu1 %v2315_v7 }
 0x347   :  { %1944 = vmatpush3.bf16.msra.mxu0 %v2149_v52  ;;  %1964 = vmatpush3.bf16.msra.mxu1 %v2150_v53 }
 0x348   :  { %1945 = vmatprep.subr.bf16.mxu0 %v2315_v7  ;;  %1965 = vmatprep.subr.bf16.mxu1 %v2315_v7 }
 0x34b   :  { %1946 = vmatpush3.bf16.msra.mxu0 %v2151_v54  ;;  %1966 = vmatpush3.bf16.msra.mxu1 %v2152_v55 }
 0x34c   :  { %1947 = vmatprep.subr.bf16.mxu0 %v2315_v7  ;;  %1967 = vmatprep.subr.bf16.mxu1 %v2315_v7 }
 0x34f   :  { %1948 = vmatpush3.bf16.msra.mxu0 %v2153_v58  ;;  %1968 = vmatpush3.bf16.msra.mxu1 %v2154_v59 }
 0x350   :  { %1973 = vmatprep.subr.bf16.mxu0 %v2315_v7  ;;  %1993 = vmatprep.subr.bf16.mxu1 %v2315_v7 }
 0x352   :  { %1950 = vmatmul.mubr.bf16.vlgmr.msra.gmra.mrb[12].mxu0 %v965_v62  ;;  %1970 = vmatmul.mubr.bf16.vlgmr.msra.gmra.mrb[16].mxu1 %v1076_v4 }
 0x353   :  { %1974 = vmatpush3.bf16.msra.mxu0 %v2155_v1  ;;  %1994 = vmatpush3.bf16.msra.mxu1 %v2156_v3 }
 0x354   :  { %1975 = vmatprep.subr.bf16.mxu0 %v2315_v7  ;;  %1995 = vmatprep.subr.bf16.mxu1 %v2315_v7 }
 0x355   :  { %1989 = vmatprep.mubr.msk.bf16.mxu0 %vm2317_vm1, %v2315_v7  ;;  %2009 = vmatprep.mubr.msk.bf16.mxu1 %vm2317_vm1, %v2315_v7 }
 0x357   :  { %1976 = vmatpush3.bf16.msra.mxu0 %v2157_v5  ;;  %1996 = vmatpush3.bf16.msra.mxu1 %v2158_v6 }
 0x358   :  { %1977 = vmatprep.subr.bf16.mxu0 %v2315_v7  ;;  %1997 = vmatprep.subr.bf16.mxu1 %v2315_v7 }
 0x35b   :  { %1978 = vmatpush3.bf16.msra.mxu0 %v2159_v8  ;;  %1998 = vmatpush3.bf16.msra.mxu1 %v2160_v9 }
 0x35c   :  { %1979 = vmatprep.subr.bf16.mxu0 %v2315_v7  ;;  %1999 = vmatprep.subr.bf16.mxu1 %v2315_v7 }
 0x35f   :  { %1980 = vmatpush3.bf16.msra.mxu0 %v2161_v10  ;;  %2000 = vmatpush3.bf16.msra.mxu1 %v2162_v11  ;;  %v1762_v10 = vld [vmem:[%s2686_s6] ss:$0 sm:$0xff] }
 0x360   :  { %1981 = vmatprep.subr.bf16.mxu0 %v2315_v7  ;;  %2001 = vmatprep.subr.bf16.mxu1 %v2315_v7 }
 0x363   :  { %1982 = vmatpush3.bf16.msra.mxu0 %v2163_v12  ;;  %2002 = vmatpush3.bf16.msra.mxu1 %v2164_v13 }
 0x364   :  { %1983 = vmatprep.subr.bf16.mxu0 %v2315_v7  ;;  %2003 = vmatprep.subr.bf16.mxu1 %v2315_v7 }
 0x367   :  { %1984 = vmatpush3.bf16.msra.mxu0 %v2165_v14  ;;  %2004 = vmatpush3.bf16.msra.mxu1 %v2166_v15 }
 0x368   :  { %1985 = vmatprep.subr.bf16.mxu0 %v2315_v7  ;;  %2005 = vmatprep.subr.bf16.mxu1 %v2315_v7 }
 0x36b   :  { %1986 = vmatpush3.bf16.msra.mxu0 %v2167_v16  ;;  %2006 = vmatpush3.bf16.msra.mxu1 %v2168_v17 }
 0x36c   :  { %1987 = vmatprep.subr.bf16.mxu0 %v2315_v7  ;;  %2007 = vmatprep.subr.bf16.mxu1 %v2315_v7 }
 0x36f   :  { %1988 = vmatpush3.bf16.msra.mxu0 %v2169_v18  ;;  %2008 = vmatpush3.bf16.msra.mxu1 %v2170_v19 }
 0x370   :  { %2013 = vmatprep.subr.bf16.mxu0 %v2315_v7  ;;  %2033 = vmatprep.subr.bf16.mxu1 %v2315_v7 }
 0x372   :  { %1990 = vmatmul.mubr.bf16.vlgmr.msra.gmra.mrb[16].mxu0 %v1192_v22  ;;  %2010 = vmatmul.mubr.bf16.vlgmr.msra.gmra.mrb[20].mxu1 %v1303_v23 }
 0x373   :  { %2014 = vmatpush3.bf16.msra.mxu0 %v2171_v20  ;;  %2034 = vmatpush3.bf16.msra.mxu1 %v2172_v21 }
 0x374   :  { %2015 = vmatprep.subr.bf16.mxu0 %v2315_v7  ;;  %2035 = vmatprep.subr.bf16.mxu1 %v2315_v7 }
 0x375   :  { %2029 = vmatprep.mubr.msk.bf16.mxu0 %vm2317_vm1, %v2315_v7  ;;  %2049 = vmatprep.mubr.msk.bf16.mxu1 %vm2317_vm1, %v2315_v7 }
 0x377   :  { %2016 = vmatpush3.bf16.msra.mxu0 %v2173_v24  ;;  %2036 = vmatpush3.bf16.msra.mxu1 %v2174_v2 }
 0x378   :  { %2017 = vmatprep.subr.bf16.mxu0 %v2315_v7  ;;  %2037 = vmatprep.subr.bf16.mxu1 %v2315_v7 }
 0x37b   :  { %2018 = vmatpush3.bf16.msra.mxu0 %v2175_v25  ;;  %2038 = vmatpush3.bf16.msra.mxu1 %v2176_v34 }
 0x37c   :  { %2019 = vmatprep.subr.bf16.mxu0 %v2315_v7  ;;  %2039 = vmatprep.subr.bf16.mxu1 %v2315_v7 }
 0x37f   :  { %2020 = vmatpush3.bf16.msra.mxu0 %v2177_v26  ;;  %2040 = vmatpush3.bf16.msra.mxu1 %v2178_v27 }
 0x380   :  { %2021 = vmatprep.subr.bf16.mxu0 %v2315_v7  ;;  %2041 = vmatprep.subr.bf16.mxu1 %v2315_v7 }
 0x383   :  { %2022 = vmatpush3.bf16.msra.mxu0 %v2179_v28  ;;  %2042 = vmatpush3.bf16.msra.mxu1 %v2180_v29 }
 0x384   :  { %2023 = vmatprep.subr.bf16.mxu0 %v2315_v7  ;;  %2043 = vmatprep.subr.bf16.mxu1 %v2315_v7 }
 0x387   :  { %2024 = vmatpush3.bf16.msra.mxu0 %v2181_v30  ;;  %2044 = vmatpush3.bf16.msra.mxu1 %v2182_v31 }
 0x388   :  { %2025 = vmatprep.subr.bf16.mxu0 %v2315_v7  ;;  %2045 = vmatprep.subr.bf16.mxu1 %v2315_v7 }
 0x38b   :  { %2026 = vmatpush3.bf16.msra.mxu0 %v2183_v32  ;;  %2046 = vmatpush3.bf16.msra.mxu1 %v2184_v33 }
 0x38c   :  { %2027 = vmatprep.subr.bf16.mxu0 %v2315_v7  ;;  %2047 = vmatprep.subr.bf16.mxu1 %v2315_v7 }
 0x38f   :  { %2028 = vmatpush3.bf16.msra.mxu0 %v2185_v35  ;;  %2048 = vmatpush3.bf16.msra.mxu1 %v2186_v36 }
 0x392   :  { %2030 = vmatmul.mubr.bf16.vlgmr.msra.gmra.mrb[20].mxu0 %v1414_v37  ;;  %2050 = vmatmul.mubr.bf16.vlgmr.msra.gmra.mrb[24].mxu1 %v1525_v38 }
 0x405   :  { %v847_v39 = vpop.f32.mrb[8].mxu0  ;;  %v939_v40 = vpop.f32.mrb[12].mxu1 }
 0x406   :  { %v940_v41 = vadd.f32 %v939_v40, %v847_v39  ;;  %v1911_v42 = vpop.f32.mrb[9].mxu0  ;;  %v1931_v43 = vpop.f32.mrb[13].mxu1 }
 0x407   :  { %v850_v46 = vpop.f32.mrb[10].mxu0  ;;  %v942_v47 = vpop.f32.mrb[14].mxu1 }
 0x408   :  { %v1912_v48 = vpop.f32.mrb[11].mxu0  ;;  %v1932_v49 = vpop.f32.mrb[15].mxu1 }
 0x425   :  { %v1049_v7 = vpop.f32.mrb[12].mxu0  ;;  %v1160_v50 = vpop.f32.mrb[16].mxu1 }
 0x426   :  { %v1055_v51 = vadd.f32 %v1049_v7, %v940_v41  ;;  %v1951_v52 = vpop.f32.mrb[13].mxu0  ;;  %v1971_v53 = vpop.f32.mrb[17].mxu1 }
 0x427   :  { %v1052_v44 = vpop.f32.mrb[14].mxu0  ;;  %v1163_v54 = vpop.f32.mrb[18].mxu1 }
 0x428   :  { %v1166_v55 = vadd.f32 %v1160_v50, %v1055_v51  ;;  %v1952_v45 = vpop.f32.mrb[15].mxu0  ;;  %v1972_v56 = vpop.f32.mrb[19].mxu1 }
 0x445   :  { %v1276_v57 = vpop.f32.mrb[16].mxu0  ;;  %v1387_v58 = vpop.f32.mrb[20].mxu1 }
 0x446   :  { %v1282_v59 = vadd.f32 %v1276_v57, %v1166_v55  ;;  %v1991_v60 = vpop.f32.mrb[17].mxu0  ;;  %v2011_v61 = vpop.f32.mrb[21].mxu1 }
 0x447   :  { %v1279_v63 = vpop.f32.mrb[18].mxu0  ;;  %v1390_v0 = vpop.f32.mrb[22].mxu1 }
 0x448   :  { %v1393_v1 = vadd.f32 %v1387_v58, %v1282_v59  ;;  %v1992_v3 = vpop.f32.mrb[19].mxu0  ;;  %v2012_v62 = vpop.f32.mrb[23].mxu1 }
 0x465   :  { %v1498_v4 = vpop.f32.mrb[20].mxu0  ;;  %v1609_v5 = vpop.f32.mrb[24].mxu1 }
 0x466   :  { %v1504_v6 = vadd.f32 %v1498_v4, %v1393_v1  ;;  %v2031_v8 = vpop.f32.mrb[21].mxu0  ;;  %v2051_v9 = vpop.f32.mrb[25].mxu1 }
 0x467   :  { %v1501_v11 = vpop.f32.mrb[22].mxu0  ;;  %v1612_v12 = vpop.f32.mrb[26].mxu1 }
 0x468   :  { %v1615_v13 = vadd.f32 %v1609_v5, %v1504_v6  ;;  %v2032_v14 = vpop.f32.mrb[23].mxu0  ;;  %v2052_v15 = vpop.f32.mrb[27].mxu1 }
 0x46a   :  { %v1623_v16 = vadd.f32 %v1762_v10, %v1615_v13 }
 0x46c   :  { %1624 = vst [vmem:[#allocation10] sm:$0x3] %v1623_v16 }
 0x46d   :  { %2286 = shalt.err (!%p2283_p8)
}
 0x46e   :  { %s2287_s6 = scalar_lea.hbm %s2687_s7, 32 }
 0x46f   :  { %p2288_p9 = scmp.ne.s32.totalorder %s2687_s7, %s2287_s6  ;;  %p2291_p10 = scmp.lt.u32.totalorder %s2287_s6, %s2687_s7 }
 0x471   :  { %p2293_p11 = pnand %p2291_p10, %p2288_p9 }
 0x473   :  { %2296 = shalt.err (!%p2293_p11)
}
 0x474   :  { %1634 = dma.vmem_to_hbm [thread:$0]  %s1632_s8, 32, %s2687_s7, [#allocation4]  }
 0x475   :  { %2303 = dma.done.wait [#allocation4], 32  }
 0x476   :  { %2304 = vsyncadd [#allocation4], 4294967264 }
 0x477   :  { %1638 = vsyncpa [#allocation3], 1 }
 0x478   :  { %1639 = vsyncpa [#allocation6], 1 }
 0x479   :  { %1640 = vsyncpa [#allocation9], 1 }
 0x47a   :  { %1641 = vsyncpa [#allocation4], 1 }

</bundles_post_ra>
